<compile_context>
chip_gen: v6e
topology: v6e:2x2x1
jax: 0.10.0
libtpu: 0.0.40
codegen_flags: <defaults>
</compile_context>

<pallas_src>
import functools

import jax
import jax.numpy as jnp
from jax import lax
from jax.experimental import pallas as pl
from jax.experimental.pallas import tpu as pltpu

ATOM_FEATURE_DIMS = [119, 4, 12, 12, 10, 6, 6, 2, 2]   # ogb full_atom_feature_dims
BOND_FEATURE_DIMS = [5, 6, 2]                            # ogb full_bond_feature_dims
BN_EPS = 1e-5
LANE = 128   # lane width: feature dims padded to multiples of this
SUB = 8      # sublane tile: node count padded to multiples of this


def _ceil_to(x, m):
    return (x + m - 1) // m * m


def _pad2(a, rows, cols):
    out = jnp.zeros((rows, cols), jnp.float32)
    return out.at[:a.shape[0], :a.shape[1]].set(a)


def _pad1(a, cols):
    out = jnp.zeros((cols,), jnp.float32)
    return out.at[:a.shape[0]].set(a)


# --------------------------------------------------------------------------- kernel
def _gnn_vn_kernel(src_ref, off_ref,                      # scalar prefetch (SMEM)
                   h0_ref, pT_ref, pool_ref, eemb_ref,    # VMEM inputs
                   w1_ref, st1_ref, w2_ref, st2_ref,
                   wa_ref, sta_ref, wb_ref, stb_ref,
                   out_ref,                               # output, resident across layers (carries h)
                   hin_ref, aggr_ref, vn_ref,             # VMEM scratch
                   *, num_layer, nblocks):
    l = pl.program_id(0)
    last = num_layer - 1
    Dp = out_ref.shape[1]

    # ---- h_list[l] = h_list[l] + vn[batch]  (layer 0: vn == 0 -> skip the matmul) ----
    @pl.when(l == 0)
    def _():
        vn_ref[...] = jnp.zeros_like(vn_ref)
        hin_ref[...] = h0_ref[...]

    @pl.when(l > 0)
    def _():
        hin_ref[...] = out_ref[...] + jnp.dot(
            pT_ref[...], vn_ref[...].astype(jnp.bfloat16),
            preferred_element_type=jnp.float32)

    # ---- GIN message passing, index-driven (edges pre-sorted by destination) ----
    # aggr[n] = sum_{e in [off[n], off[n+1])} relu(hin[src[e]] + edge_emb[e])
    def node_block(nb, carry):
        base = pl.multiple_of(nb * SUB, SUB)
        rows = []
        for r in range(SUB):                       # static 8-row unroll (one sublane tile)
            lo = off_ref[base + r]
            hi = off_ref[base + r + 1]

            def edge_sum(e, acc):
                s = src_ref[e]
                msg = hin_ref[pl.ds(s, 1), :] + eemb_ref[pl.ds(e, 1), :]
                return acc + jnp.maximum(msg, 0.0)

            rows.append(lax.fori_loop(lo, hi, edge_sum,
                                      jnp.zeros((1, Dp), jnp.float32)))
        aggr_ref[pl.ds(base, SUB), :] = jnp.concatenate(rows, axis=0)
        return carry

    lax.fori_loop(0, nblocks, node_block, 0)

    # ---- GIN update MLP + per-layer BatchNorm (eval mode, folded); eps == 0 ----
    hin = hin_ref[...]
    z = hin + aggr_ref[...]
    t = jnp.dot(z.astype(jnp.bfloat16), w1_ref[...],
                preferred_element_type=jnp.float32)
    t = jnp.maximum(t * st1_ref[0:1, :] + st1_ref[1:2, :], 0.0)
    o = jnp.dot(t.astype(jnp.bfloat16), w2_ref[...],
                preferred_element_type=jnp.float32)
    o = o * st2_ref[0:1, :] + st2_ref[1:2, :]
    # TODO(synk): dropout omitted (eval-mode forward; training-mode dropout is stochastic)

    @pl.when(l < last)
    def _():
        out_ref[...] = jnp.maximum(o, 0.0)         # ReLU on all but the last layer

    @pl.when(l == last)
    def _():
        out_ref[...] = o

    # ---- virtual-node update (layers 0 .. num_layer-2) ----
    @pl.when(l < last)
    def _():
        vt = jnp.dot(pool_ref[...], hin.astype(jnp.bfloat16),
                     preferred_element_type=jnp.float32) + vn_ref[...]
        a = jnp.dot(vt.astype(jnp.bfloat16), wa_ref[...],
                    preferred_element_type=jnp.float32)
        a = jnp.maximum(a * sta_ref[0:1, :] + sta_ref[1:2, :], 0.0)
        b = jnp.dot(a.astype(jnp.bfloat16), wb_ref[...],
                    preferred_element_type=jnp.float32)
        vn_ref[...] = jnp.maximum(b * stb_ref[0:1, :] + stb_ref[1:2, :], 0.0)


# --------------------------------------------------------------------------- pallas wrapper
def gnn_forward_pallas(packed, h0, pT, pool, eemb, src_s, off, num_layer):
    Np, Dp = h0.shape
    G = pT.shape[1]
    E = eemb.shape[1]
    Hp = packed["w1"].shape[2]
    L = num_layer
    nblocks = Np // SUB

    kernel = functools.partial(_gnn_vn_kernel, num_layer=L, nblocks=nblocks)

    def fixed(l, *_):
        return (0, 0)

    def per_layer(l, *_):
        return (l, 0, 0)

    def per_vn_layer(l, *_):
        return (jnp.minimum(l, L - 2), 0, 0)

    grid_spec = pltpu.PrefetchScalarGridSpec(
        num_scalar_prefetch=2,
        grid=(L,),
        in_specs=[
            pl.BlockSpec((Np, Dp), fixed),               # h0 (read at layer 0)
            pl.BlockSpec((Np, G), fixed),                # pT  [Np,G]  (vn broadcast)
            pl.BlockSpec((G, Np), fixed),                # pool [G,Np] (global_add_pool)
            pl.BlockSpec((None, E, Dp), per_layer),      # per-layer bond embeddings
            pl.BlockSpec((None, Dp, Hp), per_layer),     # GIN mlp W1
            pl.BlockSpec((None, 2, Hp), per_layer),      # folded BN1 scale/shift (+bias)
            pl.BlockSpec((None, Hp, Dp), per_layer),     # GIN mlp W2
            pl.BlockSpec((None, 2, Dp), per_layer),      # folded outer-BN scale/shift (+bias)
            pl.BlockSpec((None, Dp, Hp), per_vn_layer),  # vn mlp Wa
            pl.BlockSpec((None, 2, Hp), per_vn_layer),   # vn folded BNa
            pl.BlockSpec((None, Hp, Dp), per_vn_layer),  # vn mlp Wb
            pl.BlockSpec((None, 2, Dp), per_vn_layer),   # vn folded BNb
        ],
        out_specs=pl.BlockSpec((Np, Dp), fixed),
        scratch_shapes=[
            pltpu.VMEM((Np, Dp), jnp.float32),   # hin (h + vn[batch]) for this layer
            pltpu.VMEM((Np, Dp), jnp.float32),   # aggregated messages
            pltpu.VMEM((G, Dp), jnp.float32),    # virtual-node embedding carry
        ],
    )

    return pl.pallas_call(
        kernel,
        grid_spec=grid_spec,
        out_shape=jax.ShapeDtypeStruct((Np, Dp), jnp.float32),
        compiler_params=pltpu.CompilerParams(
            dimension_semantics=("arbitrary",),          # layers are sequential
            vmem_limit_bytes=32 * 1024 * 1024),
    )(src_s, off, h0, pT, pool, eemb,
      packed["w1"], packed["st1"], packed["w2"], packed["st2"],
      packed["wa"], packed["sta"], packed["wb"], packed["stb"])


# --------------------------------------------------------------------------- params
def _folded_bn(dim):
    # PyTorch default init: gamma=1, beta=0, running_mean=0, running_var=1 (eval mode)
    scale = jnp.full((dim,), 1.0 / jnp.sqrt(1.0 + BN_EPS), jnp.float32)
    shift = jnp.zeros((dim,), jnp.float32)
    return scale, shift


def init_params(key, num_layer, emb_dim):
    keys = iter(jax.random.split(key, 4096))
    nk = lambda: next(keys)
    D = emb_dim
    params = {
        "atom_tables": [0.1 * jax.random.normal(nk(), (d, D), jnp.float32)
                        for d in ATOM_FEATURE_DIMS],
        "layers": [],
        "vn_layers": [],
    }
    for _ in range(num_layer):
        bn1_s, bn1_t = _folded_bn(2 * D)
        bno_s, bno_t = _folded_bn(D)
        params["layers"].append({
            "bond_tables": [0.1 * jax.random.normal(nk(), (d, D), jnp.float32)
                            for d in BOND_FEATURE_DIMS],
            "eps": 0.0,  # GINConv eps deterministic init
            "w1": 0.1 * jax.random.normal(nk(), (D, 2 * D), jnp.float32),
            "b1": 0.1 * jax.random.normal(nk(), (2 * D,), jnp.float32),
            "bn1_s": bn1_s, "bn1_t": bn1_t,
            "w2": 0.1 * jax.random.normal(nk(), (2 * D, D), jnp.float32),
            "b2": 0.1 * jax.random.normal(nk(), (D,), jnp.float32),
            "bno_s": bno_s, "bno_t": bno_t,
        })
    for _ in range(num_layer - 1):
        bna_s, bna_t = _folded_bn(2 * D)
        bnb_s, bnb_t = _folded_bn(D)
        params["vn_layers"].append({
            "wa": 0.1 * jax.random.normal(nk(), (D, 2 * D), jnp.float32),
            "ba": 0.1 * jax.random.normal(nk(), (2 * D,), jnp.float32),
            "bna_s": bna_s, "bna_t": bna_t,
            "wb": 0.1 * jax.random.normal(nk(), (2 * D, D), jnp.float32),
            "bb": 0.1 * jax.random.normal(nk(), (D,), jnp.float32),
            "bnb_s": bnb_s, "bnb_t": bnb_t,
        })
    return params


def pack_params(params, emb_dim):
    """Stack per-layer weights (leading layer axis), fold Linear bias + eval-mode BN
    into per-channel scale/shift, zero-pad feature dims to lane-dense multiples of 128,
    cast matmul operands to bf16."""
    D = emb_dim
    Dp = _ceil_to(D, LANE)
    Hp = _ceil_to(2 * D, LANE)

    def fold(scale, shift, bias, width):
        # BN(x@W + bias) -> (x@W)*scale + (bias*scale + shift)
        return jnp.stack([_pad1(scale, width), _pad1(bias * scale + shift, width)], 0)

    lys = params["layers"]
    vls = params["vn_layers"]
    return {
        "w1": jnp.stack([_pad2(p["w1"], Dp, Hp) for p in lys]).astype(jnp.bfloat16),
        "st1": jnp.stack([fold(p["bn1_s"], p["bn1_t"], p["b1"], Hp) for p in lys]),
        "w2": jnp.stack([_pad2(p["w2"], Hp, Dp) for p in lys]).astype(jnp.bfloat16),
        "st2": jnp.stack([fold(p["bno_s"], p["bno_t"], p["b2"], Dp) for p in lys]),
        "wa": jnp.stack([_pad2(p["wa"], Dp, Hp) for p in vls]).astype(jnp.bfloat16),
        "sta": jnp.stack([fold(p["bna_s"], p["bna_t"], p["ba"], Hp) for p in vls]),
        "wb": jnp.stack([_pad2(p["wb"], Hp, Dp) for p in vls]).astype(jnp.bfloat16),
        "stb": jnp.stack([fold(p["bnb_s"], p["bnb_t"], p["bb"], Dp) for p in vls]),
    }


# --------------------------------------------------------------------------- glue / forward
def _prepare(params, x_atom, edge_index, edge_attr, batch, emb_dim, num_graphs):
    N = x_atom.shape[0]
    E = edge_index.shape[1]
    D = emb_dim
    G = num_graphs
    Dp = _ceil_to(D, LANE)
    Np = _ceil_to(N, SUB)

    # AtomEncoder: sum of per-feature embedding lookups (one-time glue)
    h0 = jnp.zeros((N, D), jnp.float32)
    for i, tbl in enumerate(params["atom_tables"]):
        h0 = h0 + tbl[x_atom[:, i]]
    h0 = _pad2(h0, Np, Dp)

    # Sort edges by destination -> CSR offsets for in-kernel segment aggregation
    src, dst = edge_index[0], edge_index[1]
    perm = jnp.argsort(dst)
    src_s = src[perm].astype(jnp.int32)
    dst_s = dst[perm].astype(jnp.int32)
    off = jnp.searchsorted(dst_s, jnp.arange(Np + 1, dtype=jnp.int32)).astype(jnp.int32)
    ea_s = edge_attr[perm]

    # Per-layer BondEncoder, stacked once so the single pallas_call pipelines them
    eembs = []
    for lp in params["layers"]:
        e = jnp.zeros((E, D), jnp.float32)
        for i, tbl in enumerate(lp["bond_tables"]):
            e = e + tbl[ea_s[:, i]]
        eembs.append(_pad2(e, E, Dp))
    eemb = jnp.stack(eembs)                                       # [L, E, Dp] f32

    # Graph membership matrices (tiny, exact in bf16)
    batch_p = jnp.concatenate([batch.astype(jnp.int32),
                               jnp.full((Np - N,), G, jnp.int32)])
    pT = jax.nn.one_hot(batch_p, G, dtype=jnp.bfloat16)           # [Np, G]
    pool = pT.T                                                   # [G, Np]

    return {"h0": h0, "pT": pT, "pool": pool, "eemb": eemb,
            "src": src_s, "dst": dst_s, "off": off,
            "packed": pack_params(params, emb_dim)}


def gnn_node_virtualnode_forward(params, x_atom, edge_index, edge_attr, batch,
                                 num_layer, emb_dim, num_graphs):
    if num_layer < 2:
        raise ValueError("Number of GNN layers must be greater than 1.")
    p = _prepare(params, x_atom, edge_index, edge_attr, batch, emb_dim, num_graphs)
    out = gnn_forward_pallas(p["packed"], p["h0"], p["pT"], p["pool"], p["eemb"],
                             p["src"], p["off"], num_layer)
    return out[:x_atom.shape[0], :emb_dim]       # JK == 'last'


# --------------------------------------------------------------------------- pure-JAX reference
def gnn_node_virtualnode_reference(params, x_atom, edge_index, edge_attr, batch,
                                   num_layer, emb_dim, num_graphs):
    p = _prepare(params, x_atom, edge_index, edge_attr, batch, emb_dim, num_graphs)
    pk, h0, pT, pool, eemb = p["packed"], p["h0"], p["pT"], p["pool"], p["eemb"]
    src_s, dst_s = p["src"], p["dst"]
    Np, Dp = h0.shape
    vn = jnp.zeros((pool.shape[0], Dp), jnp.float32)
    h = h0
    for l in range(num_layer):
        hin = h + jnp.dot(pT, vn.astype(jnp.bfloat16), preferred_element_type=jnp.float32)
        msgs = jnp.maximum(hin[src_s] + eemb[l], 0.0)
        aggr = jax.ops.segment_sum(msgs, dst_s, num_segments=Np)
        z = hin + aggr
        t = jnp.dot(z.astype(jnp.bfloat16), pk["w1"][l], preferred_element_type=jnp.float32)
        t = jnp.maximum(t * pk["st1"][l, 0] + pk["st1"][l, 1], 0.0)
        o = jnp.dot(t.astype(jnp.bfloat16), pk["w2"][l], preferred_element_type=jnp.float32)
        o = o * pk["st2"][l, 0] + pk["st2"][l, 1]
        if l < num_layer - 1:
            o = jnp.maximum(o, 0.0)
            vt = jnp.dot(pool, hin.astype(jnp.bfloat16),
                         preferred_element_type=jnp.float32) + vn
            a = jnp.dot(vt.astype(jnp.bfloat16), pk["wa"][l], preferred_element_type=jnp.float32)
            a = jnp.maximum(a * pk["sta"][l, 0] + pk["sta"][l, 1], 0.0)
            b = jnp.dot(a.astype(jnp.bfloat16), pk["wb"][l], preferred_element_type=jnp.float32)
            vn = jnp.maximum(b * pk["stb"][l, 0] + pk["stb"][l, 1], 0.0)
        h = o
    return h[:x_atom.shape[0], :emb_dim]


# --------------------------------------------------------------------------- main
if __name__ == "__main__":
    num_layer = 3
    emb_dim = 32
    N, E, G = 16, 32, 2

    root = jax.random.PRNGKey(0)
    kx, ke, ks, kd, kp = jax.random.split(root, 5)

    # node features: [N, 9] categorical atom features
    xk = jax.random.split(kx, len(ATOM_FEATURE_DIMS))
    x_atom = jnp.concatenate(
        [jax.random.randint(k, (N, 1), 0, d) for k, d in zip(xk, ATOM_FEATURE_DIMS)],
        axis=1).astype(jnp.int32)

    # edge features: [E, 3] categorical bond features
    ek = jax.random.split(ke, len(BOND_FEATURE_DIMS))
    edge_attr = jnp.concatenate(
        [jax.random.randint(k, (E, 1), 0, d) for k, d in zip(ek, BOND_FEATURE_DIMS)],
        axis=1).astype(jnp.int32)

    # edges within graphs (graph 0 = nodes 0..7, graph 1 = nodes 8..15)
    src0 = jax.random.randint(ks, (E // 2,), 0, N // 2)
    dst0 = jax.random.randint(kd, (E // 2,), 0, N // 2)
    src = jnp.concatenate([src0, src0 + N // 2]).astype(jnp.int32)
    dst = jnp.concatenate([dst0, dst0 + N // 2]).astype(jnp.int32)
    edge_index = jnp.stack([src, dst], axis=0)

    batch = jnp.concatenate([jnp.zeros(N // 2, jnp.int32),
                             jnp.ones(N // 2, jnp.int32)])

    params = init_params(kp, num_layer, emb_dim)

    fwd = jax.jit(functools.partial(gnn_node_virtualnode_forward,
                                    num_layer=num_layer, emb_dim=emb_dim,
                                    num_graphs=G))
    out = jax.block_until_ready(fwd(params, x_atom, edge_index, edge_attr, batch))
    assert out.shape == (N, emb_dim) and out.dtype == jnp.float32

    ref = gnn_node_virtualnode_reference(params, x_atom, edge_index, edge_attr, batch,
                                         num_layer, emb_dim, G)
    max_err = float(jnp.max(jnp.abs(out - ref)))
    assert max_err < 1e-3, f"kernel/reference mismatch: max_err={max_err}"
    print("KERNEL_OK")
</pallas_src>

<mosaic_0001>
module attributes {stable_mosaic.version = 11 : i64} {
  func.func @_gnn_vn_kernel(%arg0: i32, %arg1: memref<32xi32, #tpu.memory_space<smem>>, %arg2: memref<17xi32, #tpu.memory_space<smem>>, %arg3: memref<16x128xf32, #tpu.memory_space<vmem>>, %arg4: memref<16x2xbf16, #tpu.memory_space<vmem>>, %arg5: memref<2x16xbf16, #tpu.memory_space<vmem>>, %arg6: memref<1x32x128xf32, #tpu.memory_space<vmem>>, %arg7: memref<1x128x128xbf16, #tpu.memory_space<vmem>>, %arg8: memref<1x2x128xf32, #tpu.memory_space<vmem>>, %arg9: memref<1x128x128xbf16, #tpu.memory_space<vmem>>, %arg10: memref<1x2x128xf32, #tpu.memory_space<vmem>>, %arg11: memref<1x128x128xbf16, #tpu.memory_space<vmem>>, %arg12: memref<1x2x128xf32, #tpu.memory_space<vmem>>, %arg13: memref<1x128x128xbf16, #tpu.memory_space<vmem>>, %arg14: memref<1x2x128xf32, #tpu.memory_space<vmem>>, %arg15: memref<16x128xf32, #tpu.memory_space<vmem>>, %arg16: memref<16x128xf32, #tpu.memory_space<vmem>>, %arg17: memref<16x128xf32, #tpu.memory_space<vmem>>, %arg18: memref<2x128xf32, #tpu.memory_space<vmem>>) attributes {dimension_semantics = [#tpu.dimension_semantics<arbitrary>], iteration_bounds = array<i64: 3>, scalar_prefetch = 2 : i64, scratch_operands = 3 : i64, tpu.core_type = #tpu.core_type<tc>, window_params = [{pipeline_mode = #tpu.pipeline_mode<synchronous>, transform_indices = @transform_0, window_bounds = array<i64: 16, 128>}, {pipeline_mode = #tpu.pipeline_mode<synchronous>, transform_indices = @transform_1, window_bounds = array<i64: 16, 2>}, {pipeline_mode = #tpu.pipeline_mode<synchronous>, transform_indices = @transform_2, window_bounds = array<i64: 2, 16>}, {transform_indices = @transform_3, window_bounds = array<i64: 1, 32, 128>}, {transform_indices = @transform_4, window_bounds = array<i64: 1, 128, 128>}, {transform_indices = @transform_5, window_bounds = array<i64: 1, 2, 128>}, {transform_indices = @transform_6, window_bounds = array<i64: 1, 128, 128>}, {transform_indices = @transform_7, window_bounds = array<i64: 1, 2, 128>}, {transform_indices = @transform_8, window_bounds = array<i64: 1, 128, 128>}, {transform_indices = @transform_9, window_bounds = array<i64: 1, 2, 128>}, {transform_indices = @transform_10, window_bounds = array<i64: 1, 128, 128>}, {transform_indices = @transform_11, window_bounds = array<i64: 1, 2, 128>}, {pipeline_mode = #tpu.pipeline_mode<synchronous>, transform_indices = @transform_12, window_bounds = array<i64: 16, 128>}]} {
    %c0_i32 = arith.constant 0 : i32
    %0 = arith.cmpi eq, %arg0, %c0_i32 : i32
    %1 = arith.extui %0 : i1 to i32
    %c0_i32_0 = arith.constant 0 : i32
    %2 = arith.cmpi ne, %1, %c0_i32_0 : i32
    scf.if %2 {
      %cst_33 = arith.constant 0.000000e+00 : f32
      %45 = vector.broadcast %cst_33 : f32 to vector<2x128xf32>
      %c0_34 = arith.constant 0 : index
      %c0_35 = arith.constant 0 : index
      %46 = vector.load %arg18[%c0_34, %c0_35] : memref<2x128xf32, #tpu.memory_space<vmem>>, vector<2x128xf32>
      tpu.vector_store %arg18[%c0_34, %c0_35], %45 {strides = array<i32>} : memref<2x128xf32, #tpu.memory_space<vmem>>, vector<2x128xf32>,
      %c0_36 = arith.constant 0 : index
      %c0_37 = arith.constant 0 : index
      %47 = vector.load %arg3[%c0_36, %c0_37] : memref<16x128xf32, #tpu.memory_space<vmem>>, vector<16x128xf32>
      %c0_38 = arith.constant 0 : index
      %c0_39 = arith.constant 0 : index
      %48 = vector.load %arg16[%c0_38, %c0_39] : memref<16x128xf32, #tpu.memory_space<vmem>>, vector<16x128xf32>
      tpu.vector_store %arg16[%c0_38, %c0_39], %47 {strides = array<i32>} : memref<16x128xf32, #tpu.memory_space<vmem>>, vector<16x128xf32>,
    } else {
    }
    %c0_i32_1 = arith.constant 0 : i32
    %3 = arith.cmpi sgt, %arg0, %c0_i32_1 : i32
    %4 = arith.extui %3 : i1 to i32
    %c0_i32_2 = arith.constant 0 : i32
    %5 = arith.cmpi ne, %4, %c0_i32_2 : i32
    scf.if %5 {
      %c0_33 = arith.constant 0 : index
      %c0_34 = arith.constant 0 : index
      %45 = vector.load %arg15[%c0_33, %c0_34] : memref<16x128xf32, #tpu.memory_space<vmem>>, vector<16x128xf32>
      %c0_35 = arith.constant 0 : index
      %c0_36 = arith.constant 0 : index
      %46 = vector.load %arg4[%c0_35, %c0_36] : memref<16x2xbf16, #tpu.memory_space<vmem>>, vector<16x2xbf16>
      %c0_37 = arith.constant 0 : index
      %c0_38 = arith.constant 0 : index
      %47 = vector.load %arg18[%c0_37, %c0_38] : memref<2x128xf32, #tpu.memory_space<vmem>>, vector<2x128xf32>
      %48 = arith.truncf %47 : vector<2x128xf32> to vector<2x128xbf16>
      %cst_39 = arith.constant dense<0.000000e+00> : vector<16x128xf32>
      %49 = tpu.matmul %46, %48, %cst_39 {dimension_numbers = #tpu.dot_dimension_numbers<[1], [0], [0], [1], [0, 0, 1, 1], [], []>} : vector<16x2xbf16>, vector<2x128xbf16>, vector<16x128xf32> -> vector<16x128xf32>
      %50 = arith.addf %45, %49 : vector<16x128xf32>
      %c0_40 = arith.constant 0 : index
      %c0_41 = arith.constant 0 : index
      %51 = vector.load %arg16[%c0_40, %c0_41] : memref<16x128xf32, #tpu.memory_space<vmem>>, vector<16x128xf32>
      tpu.vector_store %arg16[%c0_40, %c0_41], %50 {strides = array<i32>} : memref<16x128xf32, #tpu.memory_space<vmem>>, vector<16x128xf32>,
    } else {
    }
    %c0_i32_3 = arith.constant 0 : i32
    %c2_i32 = arith.constant 2 : i32
    %6 = arith.addi %c0_i32_3, %c2_i32 : i32
    %c1_i32 = arith.constant 1 : i32
    scf.for %arg19 = %c0_i32_3 to %6 step %c1_i32  : i32 {
      %c8_i32 = arith.constant 8 : i32
      %45 = arith.muli %arg19, %c8_i32 : i32
      %46 = tpu.assume_multiple %45, 8 : i32
      %c0_i32_33 = arith.constant 0 : i32
      %47 = arith.addi %46, %c0_i32_33 : i32
      %48 = arith.index_cast %47 : i32 to index
      %49 = memref.load %arg2[%48] : memref<17xi32, #tpu.memory_space<smem>>
      %c0_i32_34 = arith.constant 0 : i32
      %50 = arith.addi %46, %c0_i32_34 : i32
      %c1_i32_35 = arith.constant 1 : i32
      %51 = arith.addi %50, %c1_i32_35 : i32
      %52 = arith.index_cast %51 : i32 to index
      %53 = memref.load %arg2[%52] : memref<17xi32, #tpu.memory_space<smem>>
      %cst_36 = arith.constant 0.000000e+00 : f32
      %54 = vector.broadcast %cst_36 : f32 to vector<1x128xf32>
      %55 = arith.subi %53, %49 : i32
      %56 = arith.addi %49, %55 : i32
      %c1_i32_37 = arith.constant 1 : i32
      %57 = scf.for %arg20 = %49 to %56 step %c1_i32_37 iter_args(%arg21 = %54) -> (vector<1x128xf32>)  : i32 {
        %138 = arith.index_cast %arg20 : i32 to index
        %139 = memref.load %arg1[%138] : memref<32xi32, #tpu.memory_space<smem>>
        %140 = arith.index_cast %139 : i32 to index
        %c0_69 = arith.constant 0 : index
        %141 = vector.load %arg16[%140, %c0_69] : memref<16x128xf32, #tpu.memory_space<vmem>>, vector<1x128xf32>
        %c0_70 = arith.constant 0 : index
        %142 = arith.index_cast %arg20 : i32 to index
        %c0_71 = arith.constant 0 : index
        %143 = vector.load %arg6[%c0_70, %142, %c0_71] : memref<1x32x128xf32, #tpu.memory_space<vmem>>, vector<1x1x128xf32>
        %144 = vector.shape_cast %143 : vector<1x1x128xf32> to vector<1x128xf32>
        %145 = arith.addf %141, %144 : vector<1x128xf32>
        %cst_72 = arith.constant 0.000000e+00 : f32
        %146 = vector.broadcast %cst_72 : f32 to vector<1x128xf32>
        %147 = arith.maximumf %145, %146 : vector<1x128xf32>
        %148 = arith.addf %arg21, %147 : vector<1x128xf32>
        scf.yield %148 : vector<1x128xf32>
      }
      %c1_i32_38 = arith.constant 1 : i32
      %58 = arith.addi %46, %c1_i32_38 : i32
      %59 = arith.index_cast %58 : i32 to index
      %60 = memref.load %arg2[%59] : memref<17xi32, #tpu.memory_space<smem>>
      %c1_i32_39 = arith.constant 1 : i32
      %61 = arith.addi %46, %c1_i32_39 : i32
      %c1_i32_40 = arith.constant 1 : i32
      %62 = arith.addi %61, %c1_i32_40 : i32
      %63 = arith.index_cast %62 : i32 to index
      %64 = memref.load %arg2[%63] : memref<17xi32, #tpu.memory_space<smem>>
      %cst_41 = arith.constant 0.000000e+00 : f32
      %65 = vector.broadcast %cst_41 : f32 to vector<1x128xf32>
      %66 = arith.subi %64, %60 : i32
      %67 = arith.addi %60, %66 : i32
      %c1_i32_42 = arith.constant 1 : i32
      %68 = scf.for %arg20 = %60 to %67 step %c1_i32_42 iter_args(%arg21 = %65) -> (vector<1x128xf32>)  : i32 {
        %138 = arith.index_cast %arg20 : i32 to index
        %139 = memref.load %arg1[%138] : memref<32xi32, #tpu.memory_space<smem>>
        %140 = arith.index_cast %139 : i32 to index
        %c0_69 = arith.constant 0 : index
        %141 = vector.load %arg16[%140, %c0_69] : memref<16x128xf32, #tpu.memory_space<vmem>>, vector<1x128xf32>
        %c0_70 = arith.constant 0 : index
        %142 = arith.index_cast %arg20 : i32 to index
        %c0_71 = arith.constant 0 : index
        %143 = vector.load %arg6[%c0_70, %142, %c0_71] : memref<1x32x128xf32, #tpu.memory_space<vmem>>, vector<1x1x128xf32>
        %144 = vector.shape_cast %143 : vector<1x1x128xf32> to vector<1x128xf32>
        %145 = arith.addf %141, %144 : vector<1x128xf32>
        %cst_72 = arith.constant 0.000000e+00 : f32
        %146 = vector.broadcast %cst_72 : f32 to vector<1x128xf32>
        %147 = arith.maximumf %145, %146 : vector<1x128xf32>
        %148 = arith.addf %arg21, %147 : vector<1x128xf32>
        scf.yield %148 : vector<1x128xf32>
      }
      %c2_i32_43 = arith.constant 2 : i32
      %69 = arith.addi %46, %c2_i32_43 : i32
      %70 = arith.index_cast %69 : i32 to index
      %71 = memref.load %arg2[%70] : memref<17xi32, #tpu.memory_space<smem>>
      %c2_i32_44 = arith.constant 2 : i32
      %72 = arith.addi %46, %c2_i32_44 : i32
      %c1_i32_45 = arith.constant 1 : i32
      %73 = arith.addi %72, %c1_i32_45 : i32
      %74 = arith.index_cast %73 : i32 to index
      %75 = memref.load %arg2[%74] : memref<17xi32, #tpu.memory_space<smem>>
      %cst_46 = arith.constant 0.000000e+00 : f32
      %76 = vector.broadcast %cst_46 : f32 to vector<1x128xf32>
      %77 = arith.subi %75, %71 : i32
      %78 = arith.addi %71, %77 : i32
      %c1_i32_47 = arith.constant 1 : i32
      %79 = scf.for %arg20 = %71 to %78 step %c1_i32_47 iter_args(%arg21 = %76) -> (vector<1x128xf32>)  : i32 {
        %138 = arith.index_cast %arg20 : i32 to index
        %139 = memref.load %arg1[%138] : memref<32xi32, #tpu.memory_space<smem>>
        %140 = arith.index_cast %139 : i32 to index
        %c0_69 = arith.constant 0 : index
        %141 = vector.load %arg16[%140, %c0_69] : memref<16x128xf32, #tpu.memory_space<vmem>>, vector<1x128xf32>
        %c0_70 = arith.constant 0 : index
        %142 = arith.index_cast %arg20 : i32 to index
        %c0_71 = arith.constant 0 : index
        %143 = vector.load %arg6[%c0_70, %142, %c0_71] : memref<1x32x128xf32, #tpu.memory_space<vmem>>, vector<1x1x128xf32>
        %144 = vector.shape_cast %143 : vector<1x1x128xf32> to vector<1x128xf32>
        %145 = arith.addf %141, %144 : vector<1x128xf32>
        %cst_72 = arith.constant 0.000000e+00 : f32
        %146 = vector.broadcast %cst_72 : f32 to vector<1x128xf32>
        %147 = arith.maximumf %145, %146 : vector<1x128xf32>
        %148 = arith.addf %arg21, %147 : vector<1x128xf32>
        scf.yield %148 : vector<1x128xf32>
      }
      %c3_i32 = arith.constant 3 : i32
      %80 = arith.addi %46, %c3_i32 : i32
      %81 = arith.index_cast %80 : i32 to index
      %82 = memref.load %arg2[%81] : memref<17xi32, #tpu.memory_space<smem>>
      %c3_i32_48 = arith.constant 3 : i32
      %83 = arith.addi %46, %c3_i32_48 : i32
      %c1_i32_49 = arith.constant 1 : i32
      %84 = arith.addi %83, %c1_i32_49 : i32
      %85 = arith.index_cast %84 : i32 to index
      %86 = memref.load %arg2[%85] : memref<17xi32, #tpu.memory_space<smem>>
      %cst_50 = arith.constant 0.000000e+00 : f32
      %87 = vector.broadcast %cst_50 : f32 to vector<1x128xf32>
      %88 = arith.subi %86, %82 : i32
      %89 = arith.addi %82, %88 : i32
      %c1_i32_51 = arith.constant 1 : i32
      %90 = scf.for %arg20 = %82 to %89 step %c1_i32_51 iter_args(%arg21 = %87) -> (vector<1x128xf32>)  : i32 {
        %138 = arith.index_cast %arg20 : i32 to index
        %139 = memref.load %arg1[%138] : memref<32xi32, #tpu.memory_space<smem>>
        %140 = arith.index_cast %139 : i32 to index
        %c0_69 = arith.constant 0 : index
        %141 = vector.load %arg16[%140, %c0_69] : memref<16x128xf32, #tpu.memory_space<vmem>>, vector<1x128xf32>
        %c0_70 = arith.constant 0 : index
        %142 = arith.index_cast %arg20 : i32 to index
        %c0_71 = arith.constant 0 : index
        %143 = vector.load %arg6[%c0_70, %142, %c0_71] : memref<1x32x128xf32, #tpu.memory_space<vmem>>, vector<1x1x128xf32>
        %144 = vector.shape_cast %143 : vector<1x1x128xf32> to vector<1x128xf32>
        %145 = arith.addf %141, %144 : vector<1x128xf32>
        %cst_72 = arith.constant 0.000000e+00 : f32
        %146 = vector.broadcast %cst_72 : f32 to vector<1x128xf32>
        %147 = arith.maximumf %145, %146 : vector<1x128xf32>
        %148 = arith.addf %arg21, %147 : vector<1x128xf32>
        scf.yield %148 : vector<1x128xf32>
      }
      %c4_i32 = arith.constant 4 : i32
      %91 = arith.addi %46, %c4_i32 : i32
      %92 = arith.index_cast %91 : i32 to index
      %93 = memref.load %arg2[%92] : memref<17xi32, #tpu.memory_space<smem>>
      %c4_i32_52 = arith.constant 4 : i32
      %94 = arith.addi %46, %c4_i32_52 : i32
      %c1_i32_53 = arith.constant 1 : i32
      %95 = arith.addi %94, %c1_i32_53 : i32
      %96 = arith.index_cast %95 : i32 to index
      %97 = memref.load %arg2[%96] : memref<17xi32, #tpu.memory_space<smem>>
      %cst_54 = arith.constant 0.000000e+00 : f32
      %98 = vector.broadcast %cst_54 : f32 to vector<1x128xf32>
      %99 = arith.subi %97, %93 : i32
      %100 = arith.addi %93, %99 : i32
      %c1_i32_55 = arith.constant 1 : i32
      %101 = scf.for %arg20 = %93 to %100 step %c1_i32_55 iter_args(%arg21 = %98) -> (vector<1x128xf32>)  : i32 {
        %138 = arith.index_cast %arg20 : i32 to index
        %139 = memref.load %arg1[%138] : memref<32xi32, #tpu.memory_space<smem>>
        %140 = arith.index_cast %139 : i32 to index
        %c0_69 = arith.constant 0 : index
        %141 = vector.load %arg16[%140, %c0_69] : memref<16x128xf32, #tpu.memory_space<vmem>>, vector<1x128xf32>
        %c0_70 = arith.constant 0 : index
        %142 = arith.index_cast %arg20 : i32 to index
        %c0_71 = arith.constant 0 : index
        %143 = vector.load %arg6[%c0_70, %142, %c0_71] : memref<1x32x128xf32, #tpu.memory_space<vmem>>, vector<1x1x128xf32>
        %144 = vector.shape_cast %143 : vector<1x1x128xf32> to vector<1x128xf32>
        %145 = arith.addf %141, %144 : vector<1x128xf32>
        %cst_72 = arith.constant 0.000000e+00 : f32
        %146 = vector.broadcast %cst_72 : f32 to vector<1x128xf32>
        %147 = arith.maximumf %145, %146 : vector<1x128xf32>
        %148 = arith.addf %arg21, %147 : vector<1x128xf32>
        scf.yield %148 : vector<1x128xf32>
      }
      %c5_i32 = arith.constant 5 : i32
      %102 = arith.addi %46, %c5_i32 : i32
      %103 = arith.index_cast %102 : i32 to index
      %104 = memref.load %arg2[%103] : memref<17xi32, #tpu.memory_space<smem>>
      %c5_i32_56 = arith.constant 5 : i32
      %105 = arith.addi %46, %c5_i32_56 : i32
      %c1_i32_57 = arith.constant 1 : i32
      %106 = arith.addi %105, %c1_i32_57 : i32
      %107 = arith.index_cast %106 : i32 to index
      %108 = memref.load %arg2[%107] : memref<17xi32, #tpu.memory_space<smem>>
      %cst_58 = arith.constant 0.000000e+00 : f32
      %109 = vector.broadcast %cst_58 : f32 to vector<1x128xf32>
      %110 = arith.subi %108, %104 : i32
      %111 = arith.addi %104, %110 : i32
      %c1_i32_59 = arith.constant 1 : i32
      %112 = scf.for %arg20 = %104 to %111 step %c1_i32_59 iter_args(%arg21 = %109) -> (vector<1x128xf32>)  : i32 {
        %138 = arith.index_cast %arg20 : i32 to index
        %139 = memref.load %arg1[%138] : memref<32xi32, #tpu.memory_space<smem>>
        %140 = arith.index_cast %139 : i32 to index
        %c0_69 = arith.constant 0 : index
        %141 = vector.load %arg16[%140, %c0_69] : memref<16x128xf32, #tpu.memory_space<vmem>>, vector<1x128xf32>
        %c0_70 = arith.constant 0 : index
        %142 = arith.index_cast %arg20 : i32 to index
        %c0_71 = arith.constant 0 : index
        %143 = vector.load %arg6[%c0_70, %142, %c0_71] : memref<1x32x128xf32, #tpu.memory_space<vmem>>, vector<1x1x128xf32>
        %144 = vector.shape_cast %143 : vector<1x1x128xf32> to vector<1x128xf32>
        %145 = arith.addf %141, %144 : vector<1x128xf32>
        %cst_72 = arith.constant 0.000000e+00 : f32
        %146 = vector.broadcast %cst_72 : f32 to vector<1x128xf32>
        %147 = arith.maximumf %145, %146 : vector<1x128xf32>
        %148 = arith.addf %arg21, %147 : vector<1x128xf32>
        scf.yield %148 : vector<1x128xf32>
      }
      %c6_i32 = arith.constant 6 : i32
      %113 = arith.addi %46, %c6_i32 : i32
      %114 = arith.index_cast %113 : i32 to index
      %115 = memref.load %arg2[%114] : memref<17xi32, #tpu.memory_space<smem>>
      %c6_i32_60 = arith.constant 6 : i32
      %116 = arith.addi %46, %c6_i32_60 : i32
      %c1_i32_61 = arith.constant 1 : i32
      %117 = arith.addi %116, %c1_i32_61 : i32
      %118 = arith.index_cast %117 : i32 to index
      %119 = memref.load %arg2[%118] : memref<17xi32, #tpu.memory_space<smem>>
      %cst_62 = arith.constant 0.000000e+00 : f32
      %120 = vector.broadcast %cst_62 : f32 to vector<1x128xf32>
      %121 = arith.subi %119, %115 : i32
      %122 = arith.addi %115, %121 : i32
      %c1_i32_63 = arith.constant 1 : i32
      %123 = scf.for %arg20 = %115 to %122 step %c1_i32_63 iter_args(%arg21 = %120) -> (vector<1x128xf32>)  : i32 {
        %138 = arith.index_cast %arg20 : i32 to index
        %139 = memref.load %arg1[%138] : memref<32xi32, #tpu.memory_space<smem>>
        %140 = arith.index_cast %139 : i32 to index
        %c0_69 = arith.constant 0 : index
        %141 = vector.load %arg16[%140, %c0_69] : memref<16x128xf32, #tpu.memory_space<vmem>>, vector<1x128xf32>
        %c0_70 = arith.constant 0 : index
        %142 = arith.index_cast %arg20 : i32 to index
        %c0_71 = arith.constant 0 : index
        %143 = vector.load %arg6[%c0_70, %142, %c0_71] : memref<1x32x128xf32, #tpu.memory_space<vmem>>, vector<1x1x128xf32>
        %144 = vector.shape_cast %143 : vector<1x1x128xf32> to vector<1x128xf32>
        %145 = arith.addf %141, %144 : vector<1x128xf32>
        %cst_72 = arith.constant 0.000000e+00 : f32
        %146 = vector.broadcast %cst_72 : f32 to vector<1x128xf32>
        %147 = arith.maximumf %145, %146 : vector<1x128xf32>
        %148 = arith.addf %arg21, %147 : vector<1x128xf32>
        scf.yield %148 : vector<1x128xf32>
      }
      %c7_i32 = arith.constant 7 : i32
      %124 = arith.addi %46, %c7_i32 : i32
      %125 = arith.index_cast %124 : i32 to index
      %126 = memref.load %arg2[%125] : memref<17xi32, #tpu.memory_space<smem>>
      %c7_i32_64 = arith.constant 7 : i32
      %127 = arith.addi %46, %c7_i32_64 : i32
      %c1_i32_65 = arith.constant 1 : i32
      %128 = arith.addi %127, %c1_i32_65 : i32
      %129 = arith.index_cast %128 : i32 to index
      %130 = memref.load %arg2[%129] : memref<17xi32, #tpu.memory_space<smem>>
      %cst_66 = arith.constant 0.000000e+00 : f32
      %131 = vector.broadcast %cst_66 : f32 to vector<1x128xf32>
      %132 = arith.subi %130, %126 : i32
      %133 = arith.addi %126, %132 : i32
      %c1_i32_67 = arith.constant 1 : i32
      %134 = scf.for %arg20 = %126 to %133 step %c1_i32_67 iter_args(%arg21 = %131) -> (vector<1x128xf32>)  : i32 {
        %138 = arith.index_cast %arg20 : i32 to index
        %139 = memref.load %arg1[%138] : memref<32xi32, #tpu.memory_space<smem>>
        %140 = arith.index_cast %139 : i32 to index
        %c0_69 = arith.constant 0 : index
        %141 = vector.load %arg16[%140, %c0_69] : memref<16x128xf32, #tpu.memory_space<vmem>>, vector<1x128xf32>
        %c0_70 = arith.constant 0 : index
        %142 = arith.index_cast %arg20 : i32 to index
        %c0_71 = arith.constant 0 : index
        %143 = vector.load %arg6[%c0_70, %142, %c0_71] : memref<1x32x128xf32, #tpu.memory_space<vmem>>, vector<1x1x128xf32>
        %144 = vector.shape_cast %143 : vector<1x1x128xf32> to vector<1x128xf32>
        %145 = arith.addf %141, %144 : vector<1x128xf32>
        %cst_72 = arith.constant 0.000000e+00 : f32
        %146 = vector.broadcast %cst_72 : f32 to vector<1x128xf32>
        %147 = arith.maximumf %145, %146 : vector<1x128xf32>
        %148 = arith.addf %arg21, %147 : vector<1x128xf32>
        scf.yield %148 : vector<1x128xf32>
      }
      %135 = tpu.concatenate %57, %68, %79, %90, %101, %112, %123, %134 in 0 : vector<1x128xf32>, vector<1x128xf32>, vector<1x128xf32>, vector<1x128xf32>, vector<1x128xf32>, vector<1x128xf32>, vector<1x128xf32>, vector<1x128xf32> -> vector<8x128xf32>
      %136 = arith.index_cast %46 : i32 to index
      %c0_68 = arith.constant 0 : index
      %137 = vector.load %arg17[%136, %c0_68] : memref<16x128xf32, #tpu.memory_space<vmem>>, vector<8x128xf32>
      tpu.vector_store %arg17[%136, %c0_68], %135 {strides = array<i32>} : memref<16x128xf32, #tpu.memory_space<vmem>>, vector<8x128xf32>,
    }
    %c2_i32_4 = arith.constant 2 : i32
    %c0 = arith.constant 0 : index
    %c0_5 = arith.constant 0 : index
    %7 = vector.load %arg16[%c0, %c0_5] : memref<16x128xf32, #tpu.memory_space<vmem>>, vector<16x128xf32>
    %c0_6 = arith.constant 0 : index
    %c0_7 = arith.constant 0 : index
    %8 = vector.load %arg17[%c0_6, %c0_7] : memref<16x128xf32, #tpu.memory_space<vmem>>, vector<16x128xf32>
    %9 = arith.addf %7, %8 : vector<16x128xf32>
    %10 = arith.truncf %9 : vector<16x128xf32> to vector<16x128xbf16>
    %c0_8 = arith.constant 0 : index
    %c0_9 = arith.constant 0 : index
    %c0_10 = arith.constant 0 : index
    %11 = vector.load %arg7[%c0_8, %c0_9, %c0_10] : memref<1x128x128xbf16, #tpu.memory_space<vmem>>, vector<1x128x128xbf16>
    %12 = vector.shape_cast %11 : vector<1x128x128xbf16> to vector<128x128xbf16>
    %cst = arith.constant dense<0.000000e+00> : vector<16x128xf32>
    %13 = tpu.matmul %10, %12, %cst {dimension_numbers = #tpu.dot_dimension_numbers<[1], [0], [0], [1], [0, 0, 1, 1], [], []>} : vector<16x128xbf16>, vector<128x128xbf16>, vector<16x128xf32> -> vector<16x128xf32>
    %c0_11 = arith.constant 0 : index
    %c0_12 = arith.constant 0 : index
    %c0_13 = arith.constant 0 : index
    %14 = vector.load %arg8[%c0_11, %c0_12, %c0_13] : memref<1x2x128xf32, #tpu.memory_space<vmem>>, vector<1x1x128xf32>
    %15 = vector.shape_cast %14 : vector<1x1x128xf32> to vector<1x128xf32>
    %16 = vector.broadcast %15 : vector<1x128xf32> to vector<16x128xf32>
    %17 = arith.mulf %13, %16 : vector<16x128xf32>
    %c0_14 = arith.constant 0 : index
    %c1 = arith.constant 1 : index
    %c0_15 = arith.constant 0 : index
    %18 = vector.load %arg8[%c0_14, %c1, %c0_15] : memref<1x2x128xf32, #tpu.memory_space<vmem>>, vector<1x1x128xf32>
    %19 = vector.shape_cast %18 : vector<1x1x128xf32> to vector<1x128xf32>
    %20 = vector.broadcast %19 : vector<1x128xf32> to vector<16x128xf32>
    %21 = arith.addf %17, %20 : vector<16x128xf32>
    %cst_16 = arith.constant 0.000000e+00 : f32
    %22 = vector.broadcast %cst_16 : f32 to vector<16x128xf32>
    %23 = arith.maximumf %21, %22 : vector<16x128xf32>
    %24 = arith.truncf %23 : vector<16x128xf32> to vector<16x128xbf16>
    %c0_17 = arith.constant 0 : index
    %c0_18 = arith.constant 0 : index
    %c0_19 = arith.constant 0 : index
    %25 = vector.load %arg9[%c0_17, %c0_18, %c0_19] : memref<1x128x128xbf16, #tpu.memory_space<vmem>>, vector<1x128x128xbf16>
    %26 = vector.shape_cast %25 : vector<1x128x128xbf16> to vector<128x128xbf16>
    %cst_20 = arith.constant dense<0.000000e+00> : vector<16x128xf32>
    %27 = tpu.matmul %24, %26, %cst_20 {dimension_numbers = #tpu.dot_dimension_numbers<[1], [0], [0], [1], [0, 0, 1, 1], [], []>} : vector<16x128xbf16>, vector<128x128xbf16>, vector<16x128xf32> -> vector<16x128xf32>
    %c0_21 = arith.constant 0 : index
    %c0_22 = arith.constant 0 : index
    %c0_23 = arith.constant 0 : index
    %28 = vector.load %arg10[%c0_21, %c0_22, %c0_23] : memref<1x2x128xf32, #tpu.memory_space<vmem>>, vector<1x1x128xf32>
    %29 = vector.shape_cast %28 : vector<1x1x128xf32> to vector<1x128xf32>
    %30 = vector.broadcast %29 : vector<1x128xf32> to vector<16x128xf32>
    %31 = arith.mulf %27, %30 : vector<16x128xf32>
    %c0_24 = arith.constant 0 : index
    %c1_25 = arith.constant 1 : index
    %c0_26 = arith.constant 0 : index
    %32 = vector.load %arg10[%c0_24, %c1_25, %c0_26] : memref<1x2x128xf32, #tpu.memory_space<vmem>>, vector<1x1x128xf32>
    %33 = vector.shape_cast %32 : vector<1x1x128xf32> to vector<1x128xf32>
    %34 = vector.broadcast %33 : vector<1x128xf32> to vector<16x128xf32>
    %35 = arith.addf %31, %34 : vector<16x128xf32>
    %c2_i32_27 = arith.constant 2 : i32
    %36 = arith.cmpi slt, %arg0, %c2_i32_27 : i32
    %37 = arith.extui %36 : i1 to i32
    %c0_i32_28 = arith.constant 0 : i32
    %38 = arith.cmpi ne, %37, %c0_i32_28 : i32
    scf.if %38 {
      %cst_33 = arith.constant 0.000000e+00 : f32
      %45 = vector.broadcast %cst_33 : f32 to vector<16x128xf32>
      %46 = arith.maximumf %35, %45 : vector<16x128xf32>
      %c0_34 = arith.constant 0 : index
      %c0_35 = arith.constant 0 : index
      %47 = vector.load %arg15[%c0_34, %c0_35] : memref<16x128xf32, #tpu.memory_space<vmem>>, vector<16x128xf32>
      tpu.vector_store %arg15[%c0_34, %c0_35], %46 {strides = array<i32>} : memref<16x128xf32, #tpu.memory_space<vmem>>, vector<16x128xf32>,
    } else {
    }
    %c2_i32_29 = arith.constant 2 : i32
    %39 = arith.cmpi eq, %arg0, %c2_i32_29 : i32
    %40 = arith.extui %39 : i1 to i32
    %c0_i32_30 = arith.constant 0 : i32
    %41 = arith.cmpi ne, %40, %c0_i32_30 : i32
    scf.if %41 {
      %c0_33 = arith.constant 0 : index
      %c0_34 = arith.constant 0 : index
      %45 = vector.load %arg15[%c0_33, %c0_34] : memref<16x128xf32, #tpu.memory_space<vmem>>, vector<16x128xf32>
      tpu.vector_store %arg15[%c0_33, %c0_34], %35 {strides = array<i32>} : memref<16x128xf32, #tpu.memory_space<vmem>>, vector<16x128xf32>,
    } else {
    }
    %c2_i32_31 = arith.constant 2 : i32
    %42 = arith.cmpi slt, %arg0, %c2_i32_31 : i32
    %43 = arith.extui %42 : i1 to i32
    %c0_i32_32 = arith.constant 0 : i32
    %44 = arith.cmpi ne, %43, %c0_i32_32 : i32
    scf.if %44 {
      %c0_33 = arith.constant 0 : index
      %c0_34 = arith.constant 0 : index
      %45 = vector.load %arg5[%c0_33, %c0_34] : memref<2x16xbf16, #tpu.memory_space<vmem>>, vector<2x16xbf16>
      %46 = arith.truncf %7 : vector<16x128xf32> to vector<16x128xbf16>
      %cst_35 = arith.constant dense<0.000000e+00> : vector<2x128xf32>
      %47 = tpu.matmul %45, %46, %cst_35 {dimension_numbers = #tpu.dot_dimension_numbers<[1], [0], [0], [1], [0, 0, 1, 1], [], []>} : vector<2x16xbf16>, vector<16x128xbf16>, vector<2x128xf32> -> vector<2x128xf32>
      %c0_36 = arith.constant 0 : index
      %c0_37 = arith.constant 0 : index
      %48 = vector.load %arg18[%c0_36, %c0_37] : memref<2x128xf32, #tpu.memory_space<vmem>>, vector<2x128xf32>
      %49 = arith.addf %47, %48 : vector<2x128xf32>
      %50 = arith.truncf %49 : vector<2x128xf32> to vector<2x128xbf16>
      %c0_38 = arith.constant 0 : index
      %c0_39 = arith.constant 0 : index
      %c0_40 = arith.constant 0 : index
      %51 = vector.load %arg11[%c0_38, %c0_39, %c0_40] : memref<1x128x128xbf16, #tpu.memory_space<vmem>>, vector<1x128x128xbf16>
      %52 = vector.shape_cast %51 : vector<1x128x128xbf16> to vector<128x128xbf16>
      %cst_41 = arith.constant dense<0.000000e+00> : vector<2x128xf32>
      %53 = tpu.matmul %50, %52, %cst_41 {dimension_numbers = #tpu.dot_dimension_numbers<[1], [0], [0], [1], [0, 0, 1, 1], [], []>} : vector<2x128xbf16>, vector<128x128xbf16>, vector<2x128xf32> -> vector<2x128xf32>
      %c0_42 = arith.constant 0 : index
      %c0_43 = arith.constant 0 : index
      %c0_44 = arith.constant 0 : index
      %54 = vector.load %arg12[%c0_42, %c0_43, %c0_44] : memref<1x2x128xf32, #tpu.memory_space<vmem>>, vector<1x1x128xf32>
      %55 = vector.shape_cast %54 : vector<1x1x128xf32> to vector<1x128xf32>
      %56 = vector.broadcast %55 : vector<1x128xf32> to vector<2x128xf32>
      %57 = arith.mulf %53, %56 : vector<2x128xf32>
      %c0_45 = arith.constant 0 : index
      %c1_46 = arith.constant 1 : index
      %c0_47 = arith.constant 0 : index
      %58 = vector.load %arg12[%c0_45, %c1_46, %c0_47] : memref<1x2x128xf32, #tpu.memory_space<vmem>>, vector<1x1x128xf32>
      %59 = vector.shape_cast %58 : vector<1x1x128xf32> to vector<1x128xf32>
      %60 = vector.broadcast %59 : vector<1x128xf32> to vector<2x128xf32>
      %61 = arith.addf %57, %60 : vector<2x128xf32>
      %cst_48 = arith.constant 0.000000e+00 : f32
      %62 = vector.broadcast %cst_48 : f32 to vector<2x128xf32>
      %63 = arith.maximumf %61, %62 : vector<2x128xf32>
      %64 = arith.truncf %63 : vector<2x128xf32> to vector<2x128xbf16>
      %c0_49 = arith.constant 0 : index
      %c0_50 = arith.constant 0 : index
      %c0_51 = arith.constant 0 : index
      %65 = vector.load %arg13[%c0_49, %c0_50, %c0_51] : memref<1x128x128xbf16, #tpu.memory_space<vmem>>, vector<1x128x128xbf16>
      %66 = vector.shape_cast %65 : vector<1x128x128xbf16> to vector<128x128xbf16>
      %cst_52 = arith.constant dense<0.000000e+00> : vector<2x128xf32>
      %67 = tpu.matmul %64, %66, %cst_52 {dimension_numbers = #tpu.dot_dimension_numbers<[1], [0], [0], [1], [0, 0, 1, 1], [], []>} : vector<2x128xbf16>, vector<128x128xbf16>, vector<2x128xf32> -> vector<2x128xf32>
      %c0_53 = arith.constant 0 : index
      %c0_54 = arith.constant 0 : index
      %c0_55 = arith.constant 0 : index
      %68 = vector.load %arg14[%c0_53, %c0_54, %c0_55] : memref<1x2x128xf32, #tpu.memory_space<vmem>>, vector<1x1x128xf32>
      %69 = vector.shape_cast %68 : vector<1x1x128xf32> to vector<1x128xf32>
      %70 = vector.broadcast %69 : vector<1x128xf32> to vector<2x128xf32>
      %71 = arith.mulf %67, %70 : vector<2x128xf32>
      %c0_56 = arith.constant 0 : index
      %c1_57 = arith.constant 1 : index
      %c0_58 = arith.constant 0 : index
      %72 = vector.load %arg14[%c0_56, %c1_57, %c0_58] : memref<1x2x128xf32, #tpu.memory_space<vmem>>, vector<1x1x128xf32>
      %73 = vector.shape_cast %72 : vector<1x1x128xf32> to vector<1x128xf32>
      %74 = vector.broadcast %73 : vector<1x128xf32> to vector<2x128xf32>
      %75 = arith.addf %71, %74 : vector<2x128xf32>
      %cst_59 = arith.constant 0.000000e+00 : f32
      %76 = vector.broadcast %cst_59 : f32 to vector<2x128xf32>
      %77 = arith.maximumf %75, %76 : vector<2x128xf32>
      %c0_60 = arith.constant 0 : index
      %c0_61 = arith.constant 0 : index
      %78 = vector.load %arg18[%c0_60, %c0_61] : memref<2x128xf32, #tpu.memory_space<vmem>>, vector<2x128xf32>
      tpu.vector_store %arg18[%c0_60, %c0_61], %77 {strides = array<i32>} : memref<2x128xf32, #tpu.memory_space<vmem>>, vector<2x128xf32>,
    } else {
    }
    return
  }
  func.func @transform_0(%arg0: i32, %arg1: memref<32xi32, #tpu.memory_space<smem>>, %arg2: memref<17xi32, #tpu.memory_space<smem>>) -> (i32, i32) {
    %c0_i32 = arith.constant 0 : i32
    %c0_i32_0 = arith.constant 0 : i32
    %c0_i32_1 = arith.constant 0 : i32
    return %c0_i32, %c0_i32_0 : i32, i32
  }
  func.func @transform_1(%arg0: i32, %arg1: memref<32xi32, #tpu.memory_space<smem>>, %arg2: memref<17xi32, #tpu.memory_space<smem>>) -> (i32, i32) {
    %c0_i32 = arith.constant 0 : i32
    %c0_i32_0 = arith.constant 0 : i32
    %c0_i32_1 = arith.constant 0 : i32
    return %c0_i32, %c0_i32_0 : i32, i32
  }
  func.func @transform_2(%arg0: i32, %arg1: memref<32xi32, #tpu.memory_space<smem>>, %arg2: memref<17xi32, #tpu.memory_space<smem>>) -> (i32, i32) {
    %c0_i32 = arith.constant 0 : i32
    %c0_i32_0 = arith.constant 0 : i32
    %c0_i32_1 = arith.constant 0 : i32
    return %c0_i32, %c0_i32_0 : i32, i32
  }
  func.func @transform_3(%arg0: i32, %arg1: memref<32xi32, #tpu.memory_space<smem>>, %arg2: memref<17xi32, #tpu.memory_space<smem>>) -> (i32, i32, i32) {
    %c0_i32 = arith.constant 0 : i32
    %c0_i32_0 = arith.constant 0 : i32
    %c0_i32_1 = arith.constant 0 : i32
    return %arg0, %c0_i32, %c0_i32_0 : i32, i32, i32
  }
  func.func @transform_4(%arg0: i32, %arg1: memref<32xi32, #tpu.memory_space<smem>>, %arg2: memref<17xi32, #tpu.memory_space<smem>>) -> (i32, i32, i32) {
    %c0_i32 = arith.constant 0 : i32
    %c0_i32_0 = arith.constant 0 : i32
    %c0_i32_1 = arith.constant 0 : i32
    return %arg0, %c0_i32, %c0_i32_0 : i32, i32, i32
  }
  func.func @transform_5(%arg0: i32, %arg1: memref<32xi32, #tpu.memory_space<smem>>, %arg2: memref<17xi32, #tpu.memory_space<smem>>) -> (i32, i32, i32) {
    %c0_i32 = arith.constant 0 : i32
    %c0_i32_0 = arith.constant 0 : i32
    %c0_i32_1 = arith.constant 0 : i32
    return %arg0, %c0_i32, %c0_i32_0 : i32, i32, i32
  }
  func.func @transform_6(%arg0: i32, %arg1: memref<32xi32, #tpu.memory_space<smem>>, %arg2: memref<17xi32, #tpu.memory_space<smem>>) -> (i32, i32, i32) {
    %c0_i32 = arith.constant 0 : i32
    %c0_i32_0 = arith.constant 0 : i32
    %c0_i32_1 = arith.constant 0 : i32
    return %arg0, %c0_i32, %c0_i32_0 : i32, i32, i32
  }
  func.func @transform_7(%arg0: i32, %arg1: memref<32xi32, #tpu.memory_space<smem>>, %arg2: memref<17xi32, #tpu.memory_space<smem>>) -> (i32, i32, i32) {
    %c0_i32 = arith.constant 0 : i32
    %c0_i32_0 = arith.constant 0 : i32
    %c0_i32_1 = arith.constant 0 : i32
    return %arg0, %c0_i32, %c0_i32_0 : i32, i32, i32
  }
  func.func @transform_8(%arg0: i32, %arg1: memref<32xi32, #tpu.memory_space<smem>>, %arg2: memref<17xi32, #tpu.memory_space<smem>>) -> (i32, i32, i32) {
    %c1_i32 = arith.constant 1 : i32
    %0 = arith.minsi %arg0, %c1_i32 : i32
    %c0_i32 = arith.constant 0 : i32
    %c0_i32_0 = arith.constant 0 : i32
    %c0_i32_1 = arith.constant 0 : i32
    return %0, %c0_i32, %c0_i32_0 : i32, i32, i32
  }
  func.func @transform_9(%arg0: i32, %arg1: memref<32xi32, #tpu.memory_space<smem>>, %arg2: memref<17xi32, #tpu.memory_space<smem>>) -> (i32, i32, i32) {
    %c1_i32 = arith.constant 1 : i32
    %0 = arith.minsi %arg0, %c1_i32 : i32
    %c0_i32 = arith.constant 0 : i32
    %c0_i32_0 = arith.constant 0 : i32
    %c0_i32_1 = arith.constant 0 : i32
    return %0, %c0_i32, %c0_i32_0 : i32, i32, i32
  }
  func.func @transform_10(%arg0: i32, %arg1: memref<32xi32, #tpu.memory_space<smem>>, %arg2: memref<17xi32, #tpu.memory_space<smem>>) -> (i32, i32, i32) {
    %c1_i32 = arith.constant 1 : i32
    %0 = arith.minsi %arg0, %c1_i32 : i32
    %c0_i32 = arith.constant 0 : i32
    %c0_i32_0 = arith.constant 0 : i32
    %c0_i32_1 = arith.constant 0 : i32
    return %0, %c0_i32, %c0_i32_0 : i32, i32, i32
  }
  func.func @transform_11(%arg0: i32, %arg1: memref<32xi32, #tpu.memory_space<smem>>, %arg2: memref<17xi32, #tpu.memory_space<smem>>) -> (i32, i32, i32) {
    %c1_i32 = arith.constant 1 : i32
    %0 = arith.minsi %arg0, %c1_i32 : i32
    %c0_i32 = arith.constant 0 : i32
    %c0_i32_0 = arith.constant 0 : i32
    %c0_i32_1 = arith.constant 0 : i32
    return %0, %c0_i32, %c0_i32_0 : i32, i32, i32
  }
  func.func @transform_12(%arg0: i32, %arg1: memref<32xi32, #tpu.memory_space<smem>>, %arg2: memref<17xi32, #tpu.memory_space<smem>>) -> (i32, i32) {
    %c0_i32 = arith.constant 0 : i32
    %c0_i32_0 = arith.constant 0 : i32
    %c0_i32_1 = arith.constant 0 : i32
    return %c0_i32, %c0_i32_0 : i32, i32
  }
}

</mosaic_0001>

<bundles_post_ra>
// kernel: custom-call
= control target key start
LH: loop header
LB: loop body
LE: loop exit
PB: predicated region body
PF: predicated region fallthrough
CT: control target
= control target key end

     0   :  { %s6_s0 = inlined_call_operand.vmem [shape: u32[17], index: 0, kind: output, shape index: {}]  }

// kernel: gnn_node_virtualnode_forward.1
= control target key start
LH: loop header
LB: loop body
LE: loop exit
PB: predicated region body
PF: predicated region fallthrough
CT: control target
= control target key end

     0   :  { %s2716_s0 = inlined_call_operand.vmem [shape: s32[32], index: 0, kind: input, shape index: {}]   ;;  %s2717_s2 = inlined_call_operand.vmem [shape: f32[16,128], index: 2, kind: input, shape index: {}]   ;;  %s2718_s3 = inlined_call_operand.vmem [shape: bf16[16,2], index: 3, kind: input, shape index: {}]   ;;  %s2719_s4 = inlined_call_operand.vmem [shape: bf16[2,16], index: 4, kind: input, shape index: {}]   ;;  %s2720_s5 = inlined_call_operand.vmem [shape: f32[3,32,128], index: 5, kind: input, shape index: {}]   ;;  %s2721_s6 = inlined_call_operand.vmem [shape: bf16[3,128,128], index: 6, kind: input, shape index: {}]   ;;  %s2722_s7 = inlined_call_operand.vmem [shape: f32[3,2,128], index: 7, kind: input, shape index: {}]   ;;  %s2723_s8 = inlined_call_operand.vmem [shape: bf16[3,128,128], index: 8, kind: input, shape index: {}]   ;;  %s2724_s9 = inlined_call_operand.vmem [shape: f32[3,2,128], index: 9, kind: input, shape index: {}]   ;;  %s2725_s10 = inlined_call_operand.vmem [shape: bf16[2,128,128], index: 10, kind: input, shape index: {}]   ;;  %s2726_s11 = inlined_call_operand.vmem [shape: f32[2,2,128], index: 11, kind: input, shape index: {}]   ;;  %s2727_s12 = inlined_call_operand.vmem [shape: bf16[2,128,128], index: 12, kind: input, shape index: {}]   ;;  %s2728_s13 = inlined_call_operand.vmem [shape: f32[2,2,128], index: 13, kind: input, shape index: {}]   ;;  %s2729_s14 = inlined_call_operand.hbm [shape: f32[16,128], index: 14, kind: output, shape index: {}]   ;;  %s2730_s1 = inlined_call_operand.vmem [shape: s32[17], index: 1, kind: input, shape index: {}]  }
   0x1   :  { %2732 = sst [smem:[#allocation13_spill]] %s2720_s5  ;;  %s19_s15 = sshll.u32 %s2716_s0, 4  ;;  %s20_s15 = int_to_ptr.vmem [resolvable:$true] %s19_s15 }
   0x2   :  { %2733 = sst [smem:[#allocation14_spill]] %s2721_s6  ;;  %s23_s18 = sshll.u32 %s2730_s1, 4  ;;  %s24_s18 = int_to_ptr.vmem [resolvable:$true] %s23_s18 }
   0x3   :  { %2734 = sst [smem:[#allocation15_spill]] %s2729_s14  ;;  %s2134_s19 = scalar_lea.vmem %s20_s15, 16 }
   0x4   :  { %p2135_p0 = scmp.ne.s32.totalorder %s20_s15, %s2134_s19  ;;  %p2139_p1 = scmp.lt.s32.totalorder %s20_s15, %s20_s15 }
   0x5   :  { %p2140_p2 = scmp.lt.s32.totalorder %s2134_s19, %s2134_s19 }
   0x7   :  { %p2141_p3 = por %p2140_p2, %p2139_p1 }
   0x9   :  { %p2142_p4 = pnand %p2141_p3, %p2135_p0 }
   0xb   :  { %2145 = shalt.err (!%p2142_p4)  }
   0xc   :  { %s2396_s20 = smov [#allocation6]   ;;  %s2146_s21 = scalar_lea.vmem %s24_s18, 16 }
   0xd   :  { %22 = dma.vmem_to_smem %s20_s15, 16, %s2396_s20, [#allocation5] }
   0xe   :  { %p2147_p5 = scmp.ne.s32.totalorder %s24_s18, %s2146_s21  ;;  %p2151_p6 = scmp.lt.s32.totalorder %s24_s18, %s24_s18 }
   0xf   :  { %p2152_p7 = scmp.lt.s32.totalorder %s2146_s21, %s2146_s21 }
  0x11   :  { %p2153_p8 = por %p2152_p7, %p2151_p6 }
  0x13   :  { %p2154_p9 = pnand %p2153_p8, %p2147_p5 }
  0x15   :  { %2157 = shalt.err (!%p2154_p9)  }
  0x16   :  { %s2397_s0 = smov [#allocation7]  }
  0x17   :  { %26 = dma.vmem_to_smem %s24_s18, 16, %s2397_s0, [#allocation5] }
  0x18   :  { %2286 = dma.done.wait [#allocation5], 32 }
  0x19   :  { %2287 = vsyncadd [#allocation5], 4294967264 }
  0x1a   :  { %28 = sfence }
  0x1b   :  { %29 = vsyncpa [#allocation9], 0  ;;  %s2489_s1 = smov 0  }
  0x1c LB: > { %2735 = sst [smem:[#allocation12_spill]] %s2294_s1  ;;  %s2495_s22 = sadd.s32 4294967295, %s2294_s1   ;;  %s2294_s1 = sphi %s2489_s1, %s35_s1  }
  0x1d   : > { %p1658_p10 = scmp.ge.s32.totalorder %s2294_s1, 1  ;;  %p478_p11 = scmp.lt.s32.totalorder %s2294_s1, 4 }
  0x1f   : > { %p479_p12 = pnand %p1658_p10, %p478_p11 }
  0x20   : > { %p559_p13 = scmp.lt.s32.totalorder (!%p479_p12), %s2495_s22, 2  ;;  %p582_p0 = scmp.lt.s32.totalorder (!%p479_p12), %s2495_s22, 1 }
  0x21   : > { %482 = sbr.rel (%p479_p12) target bundleno = 1592 (0x638), region = 68  ;;  %s2736_s5 = sld [smem:[#allocation13_spill]] (!%p479_p12) }
  0x22   : > { %s2737_s6 = sld [smem:[#allocation14_spill]] (!%p479_p12)  ;;  %p1685_p1 = scmp.ne.s32.totalorder (!%p479_p12), %s2495_s22, 0 }
  0x26   : > { %s560_s23 = scalar_select %p559_p13, %s2495_s22, 2 }
  0x27   : > { %s583_s24 = scalar_select %p582_p0, %s2495_s22, 1 }
  0x28   : > { %s1738_s25 = sshll.u32 %s560_s23, 5  ;;  %s1739_s26 = sshll.u32 %s560_s23, 6 }
  0x29   : > { %s2506_s29 = scalar_lea.vmem %s2736_s5, %s1738_s25  ;;  %s2511_s16 = scalar_lea.vmem %s2737_s6, %s1739_s26 }
  0x2a   : > { %s1663_s17 = sshll.u32 %s560_s23, 1  ;;  %s2516_s20 = scalar_lea.vmem %s2723_s8, %s1739_s26 }
  0x2b   : > { %s2521_s1 = scalar_lea.vmem %s2722_s7, %s1663_s17  ;;  %s2526_s25 = scalar_lea.vmem %s2724_s9, %s1663_s17 }
  0x2c   : > { %s2741_s24 = smov (!%p582_p0, %s583_s24), 1  ;;  %620 = sbr.rel (%p1685_p1) target bundleno = 52 (0x34), region = 72 }
  0x2d   : > { %s1741_s28 = sshll.u32 %s2741_s24, 6  ;;  %s1675_s30 = sshll.u32 %s2741_s24, 1 }
  0x2e   : > { %s2531_s5 = scalar_lea.vmem %s2725_s10, %s1741_s28  ;;  %s2536_s19 = scalar_lea.vmem %s2726_s11, %s1675_s30 }
  0x2f   : > { %s2541_s6 = scalar_lea.vmem %s2727_s12, %s1741_s28  ;;  %s2546_s27 = scalar_lea.vmem %s2728_s13, %s1675_s30 }
  0x31   : > { %v622_v0 = vld [vmem:[%s2717_s2] sm:$0xff]  ;;  %v623_v1 = vld [vmem:[%s2717_s2 + $0x8] sm:$0xff]  ;;  %v2398_v2 = vmov 0.0  }
  0x32   : > { %621 = vst [vmem:[#allocation4] sm:$0x3] %v2398_v2  ;;  %624 = vst [vmem:[#allocation2] sm:$0xff] %v622_v0 }
  0x33   : > { %625 = vst [vmem:[#allocation2 + $0x8] sm:$0xff] %v623_v1 }
  0x34 PF: > { %p1686_p2 = scmp.le.s32.totalorder %s2495_s22, 0 }
  0x36   : > { %629 = sbr.rel (%p1686_p2) target bundleno = 266 (0x10a), region = 76 }
  0x3b   : > { %v634_v3 = vld [vmem:[#allocation4] sm:$0x3]  ;;  %vm645_vm0 = vcmask 1040384   ;;  %v2399_v4 = vmov 0.0   ;;  %vm2400_vm1 = vmmov 0   ;;  %vm641_vm2 = vcmask 15360  }
  0x3c   : > { %1783 = vmatprep.subr.bf16.mxu0 %v2399_v4  ;;  %v635_v5 = vpack.c.bf16 %v634_v3, %v634_v3  ;;  %1785 = vmatprep.mubr.msk.bf16.mxu0 %vm2400_vm1, %v2399_v4  ;;  %v2101_v7 = vld [vmem:[%s2718_s3] sm:$0xff]   ;;  %v631_v12 = vld [vmem:[#allocation8 + $0x8] sm:$0xff] }
  0x3d   : > { %v630_v8 = vld [vmem:[#allocation8] sm:$0xff] }
  0x3e   : > { %v647_v6 = vsel %vm645_vm0, %v635_v5, 0 }
  0x3f   : > { %1784 = vmatpush3.bf16.msra.mxu0 %v647_v6 }
  0x42   : > { %1786 = vmatmul.mubr.msk.bf16.vlgmr.msra.gmra.mxu0 %vm641_vm2, %v2101_v7 }
 0x102   : > { %v683_v9 = vpop.f32.mrf.mxu0 }
 0x103   : > { %v690_v10 = vadd.f32 %v683_v9, %v630_v8 }
 0x104   : > { %v1787_v11 = vpop.f32.mrf.mxu0 }
 0x105   : > { %692 = vst [vmem:[#allocation2] sm:$0xff] %v690_v10 }
 0x106   : > { %v686_v13 = vpop.f32.mrf.mxu0 }
 0x107   : > { %v691_v14 = vadd.f32 %v686_v13, %v631_v12 }
 0x108   : > { %v1788_v15 = vpop.f32.mrf.mxu0 }
 0x109   : > { %693 = vst [vmem:[#allocation2 + $0x8] sm:$0xff] %v691_v14 }
 0x10a PF: > { %s2559_s18 = smov 0  }
 0x10b LB: >> { %s2565_s21 = sshll.u32 %s2298_s18, 3  ;;  %v2308_v16 = vmov 0.0   ;;  %s2298_s18 = sphi %s2559_s18, %s699_s18  }
 0x10c   : >> { %s701_s0 = sld [smem:[#allocation7 + %s2565_s21]]   ;;  %s702_s14 = sadd.s32 1, %s2565_s21 }
 0x10d   : >> { %s2569_s17 = sld [smem:[#allocation7 + %s702_s14]]  }
 0x113   : >> { %p1522_p3 = scmp.ge.s32.totalorder %s701_s0, %s2569_s17 }
 0x114   : >> { %s2304_s24 = smov (!%p1522_p3), %s701_s0  }
 0x115   : >> { %1524 = sbr.rel (%p1522_p3) target bundleno = 298 (0x12a), region = 213 }
 0x11a   : >> { %v2300_v17 = vmov 0.0  }
 0x11b LB: >>> { %s711_s15 = sld [smem:[#allocation6 + %s2306_s24]]  ;;  %s714_s23 = scalar_lea.vmem %s2506_s29, %s2306_s24  ;;  %s2306_s24 = sphi %s2304_s24, %s707_s24   ;;  %v2302_v17 = vphi %v2300_v17, %v2301_v17  }
 0x11c   : >>> { %v715_v18 = vld [vmem:[%s714_s23] sm:$0x1]  ;;  %s707_s24 = sadd.s32 1, %s2306_s24  }
 0x11d   : >>> { %p706_p4 = scmp.ge.s32.totalorder %s707_s24, %s2569_s17 }
 0x121   : >>> { %s712_s26 = scalar_lea.vmem [#allocation2], %s711_s15 }
 0x122   : >>> { %v713_v19 = vld [vmem:[%s712_s26] sm:$0x1] }
 0x123   : >>> { %v716_v20 = vadd.f32 %v715_v18, %v713_v19 }
 0x125   : >>> { %v717_v21 = vmax.f32 %v716_v20, 0.0  ;;  %709 = sbr.rel (!%p706_p4) target bundleno = 283 (0x11b), region = 219 }
 0x127   : >>> { %v718_v22 = vadd.f32 %v2302_v17, %v717_v21  }
 0x129   : >>> { %v2301_v17 = vmov %v718_v22   ;;  %v2309_v16 = vmov (%p706_p4), %v718_v22  }
 0x12a PF: >> { %s719_s28 = sadd.s32 2, %s2565_s21  ;;  %v2320_v23 = vmov 0.0   ;;  %v2310_v16 = vphi %v2308_v16, %v2309_v16  }
 0x12b   : >> { %s2577_s30 = sld [smem:[#allocation7 + %s719_s28]]  }
 0x131   : >> { %p1530_p5 = scmp.ge.s32.totalorder %s2569_s17, %s2577_s30 }
 0x132   : >> { %s2316_s0 = smov (!%p1530_p5), %s2569_s17  }
 0x133   : >> { %1532 = sbr.rel (%p1530_p5) target bundleno = 328 (0x148), region = 224 }
 0x138   : >> { %v2312_v24 = vmov 0.0  }
 0x139 LB: >>> { %s728_s14 = sld [smem:[#allocation6 + %s2318_s0]]  ;;  %s731_s24 = scalar_lea.vmem %s2506_s29, %s2318_s0  ;;  %s2318_s0 = sphi %s2316_s0, %s724_s0   ;;  %v2314_v24 = vphi %v2312_v24, %v2313_v24  }
 0x13a   : >>> { %v732_v25 = vld [vmem:[%s731_s24] sm:$0x1]  ;;  %s724_s0 = sadd.s32 1, %s2318_s0  }
 0x13b   : >>> { %p723_p6 = scmp.ge.s32.totalorder %s724_s0, %s2577_s30 }
 0x13f   : >>> { %s729_s15 = scalar_lea.vmem [#allocation2], %s728_s14 }
 0x140   : >>> { %v730_v26 = vld [vmem:[%s729_s15] sm:$0x1] }
 0x141   : >>> { %v733_v27 = vadd.f32 %v732_v25, %v730_v26 }
 0x143   : >>> { %v734_v28 = vmax.f32 %v733_v27, 0.0  ;;  %726 = sbr.rel (!%p723_p6) target bundleno = 313 (0x139), region = 230 }
 0x145   : >>> { %v735_v29 = vadd.f32 %v2314_v24, %v734_v28  }
 0x147   : >>> { %v2313_v24 = vmov %v735_v29   ;;  %v2321_v23 = vmov (%p723_p6), %v735_v29  }
 0x148 PF: >> { %s736_s17 = sadd.s32 3, %s2565_s21  ;;  %v2332_v30 = vmov 0.0   ;;  %v2322_v23 = vphi %v2320_v23, %v2321_v23  }
 0x149   : >> { %s2587_s23 = sld [smem:[#allocation7 + %s736_s17]]  }
 0x14f   : >> { %p1538_p7 = scmp.ge.s32.totalorder %s2577_s30, %s2587_s23 }
 0x150   : >> { %s2328_s26 = smov (!%p1538_p7), %s2577_s30  }
 0x151   : >> { %1540 = sbr.rel (%p1538_p7) target bundleno = 358 (0x166), region = 235 }
 0x156   : >> { %v2324_v31 = vmov 0.0  }
 0x157 LB: >>> { %s745_s28 = sld [smem:[#allocation6 + %s2330_s26]]  ;;  %s748_s0 = scalar_lea.vmem %s2506_s29, %s2330_s26  ;;  %s2330_s26 = sphi %s2328_s26, %s741_s26   ;;  %v2326_v31 = vphi %v2324_v31, %v2325_v31  }
 0x158   : >>> { %v749_v32 = vld [vmem:[%s748_s0] sm:$0x1]  ;;  %s741_s26 = sadd.s32 1, %s2330_s26  }
 0x159   : >>> { %p740_p8 = scmp.ge.s32.totalorder %s741_s26, %s2587_s23 }
 0x15d   : >>> { %s746_s14 = scalar_lea.vmem [#allocation2], %s745_s28 }
 0x15e   : >>> { %v747_v33 = vld [vmem:[%s746_s14] sm:$0x1] }
 0x15f   : >>> { %v750_v34 = vadd.f32 %v749_v32, %v747_v33 }
 0x161   : >>> { %v751_v35 = vmax.f32 %v750_v34, 0.0  ;;  %743 = sbr.rel (!%p740_p8) target bundleno = 343 (0x157), region = 241 }
 0x163   : >>> { %v752_v36 = vadd.f32 %v2326_v31, %v751_v35  }
 0x165   : >>> { %v2325_v31 = vmov %v752_v36   ;;  %v2333_v30 = vmov (%p740_p8), %v752_v36  }
 0x166 PF: >> { %s753_s30 = sadd.s32 4, %s2565_s21  ;;  %v2344_v37 = vmov 0.0   ;;  %v2334_v30 = vphi %v2332_v30, %v2333_v30  }
 0x167   : >> { %s2597_s24 = sld [smem:[#allocation7 + %s753_s30]]  }
 0x16d   : >> { %p1546_p9 = scmp.ge.s32.totalorder %s2587_s23, %s2597_s24 }
 0x16e   : >> { %s2340_s15 = smov (!%p1546_p9), %s2587_s23  }
 0x16f   : >> { %1548 = sbr.rel (%p1546_p9) target bundleno = 388 (0x184), region = 246 }
 0x174   : >> { %v2336_v38 = vmov 0.0  }
 0x175 LB: >>> { %s762_s17 = sld [smem:[#allocation6 + %s2342_s15]]  ;;  %s765_s26 = scalar_lea.vmem %s2506_s29, %s2342_s15  ;;  %s2342_s15 = sphi %s2340_s15, %s758_s15   ;;  %v2338_v38 = vphi %v2336_v38, %v2337_v38  }
 0x176   : >>> { %v766_v39 = vld [vmem:[%s765_s26] sm:$0x1]  ;;  %s758_s15 = sadd.s32 1, %s2342_s15  }
 0x177   : >>> { %p757_p10 = scmp.ge.s32.totalorder %s758_s15, %s2597_s24 }
 0x17b   : >>> { %s763_s28 = scalar_lea.vmem [#allocation2], %s762_s17 }
 0x17c   : >>> { %v764_v40 = vld [vmem:[%s763_s28] sm:$0x1] }
 0x17d   : >>> { %v767_v41 = vadd.f32 %v766_v39, %v764_v40 }
 0x17f   : >>> { %v768_v42 = vmax.f32 %v767_v41, 0.0  ;;  %760 = sbr.rel (!%p757_p10) target bundleno = 373 (0x175), region = 252 }
 0x181   : >>> { %v769_v43 = vadd.f32 %v2338_v38, %v768_v42  }
 0x183   : >>> { %v2337_v38 = vmov %v769_v43   ;;  %v2345_v37 = vmov (%p757_p10), %v769_v43  }
 0x184 PF: >> { %s770_s23 = sadd.s32 5, %s2565_s21  ;;  %v2356_v44 = vmov 0.0   ;;  %v2346_v37 = vphi %v2344_v37, %v2345_v37  }
 0x185   : >> { %s2607_s0 = sld [smem:[#allocation7 + %s770_s23]]  }
 0x18b   : >> { %p1554_p11 = scmp.ge.s32.totalorder %s2597_s24, %s2607_s0 }
 0x18c   : >> { %s2352_s14 = smov (!%p1554_p11), %s2597_s24  }
 0x18d   : >> { %1556 = sbr.rel (%p1554_p11) target bundleno = 418 (0x1a2), region = 257 }
 0x192   : >> { %v2348_v45 = vmov 0.0  }
 0x193 LB: >>> { %s779_s30 = sld [smem:[#allocation6 + %s2354_s14]]  ;;  %s782_s15 = scalar_lea.vmem %s2506_s29, %s2354_s14  ;;  %s2354_s14 = sphi %s2352_s14, %s775_s14   ;;  %v2350_v45 = vphi %v2348_v45, %v2349_v45  }
 0x194   : >>> { %v783_v46 = vld [vmem:[%s782_s15] sm:$0x1]  ;;  %s775_s14 = sadd.s32 1, %s2354_s14  }
 0x195   : >>> { %p774_p12 = scmp.ge.s32.totalorder %s775_s14, %s2607_s0 }
 0x199   : >>> { %s780_s17 = scalar_lea.vmem [#allocation2], %s779_s30 }
 0x19a   : >>> { %v781_v47 = vld [vmem:[%s780_s17] sm:$0x1] }
 0x19b   : >>> { %v784_v48 = vadd.f32 %v783_v46, %v781_v47 }
 0x19d   : >>> { %v785_v49 = vmax.f32 %v784_v48, 0.0  ;;  %777 = sbr.rel (!%p774_p12) target bundleno = 403 (0x193), region = 263 }
 0x19f   : >>> { %v786_v50 = vadd.f32 %v2350_v45, %v785_v49  }
 0x1a1   : >>> { %v2349_v45 = vmov %v786_v50   ;;  %v2357_v44 = vmov (%p774_p12), %v786_v50  }
 0x1a2 PF: >> { %s787_s24 = sadd.s32 6, %s2565_s21  ;;  %v2368_v51 = vmov 0.0   ;;  %v2358_v44 = vphi %v2356_v44, %v2357_v44  }
 0x1a3   : >> { %s2617_s26 = sld [smem:[#allocation7 + %s787_s24]]  }
 0x1a9   : >> { %p1562_p13 = scmp.ge.s32.totalorder %s2607_s0, %s2617_s26 }
 0x1aa   : >> { %s2364_s28 = smov (!%p1562_p13), %s2607_s0  }
 0x1ab   : >> { %1564 = sbr.rel (%p1562_p13) target bundleno = 448 (0x1c0), region = 268 }
 0x1b0   : >> { %v2360_v52 = vmov 0.0  }
 0x1b1 LB: >>> { %s796_s23 = sld [smem:[#allocation6 + %s2366_s28]]  ;;  %s799_s14 = scalar_lea.vmem %s2506_s29, %s2366_s28  ;;  %s2366_s28 = sphi %s2364_s28, %s792_s28   ;;  %v2362_v52 = vphi %v2360_v52, %v2361_v52  }
 0x1b2   : >>> { %v800_v53 = vld [vmem:[%s799_s14] sm:$0x1]  ;;  %s792_s28 = sadd.s32 1, %s2366_s28  }
 0x1b3   : >>> { %p791_p0 = scmp.ge.s32.totalorder %s792_s28, %s2617_s26 }
 0x1b7   : >>> { %s797_s30 = scalar_lea.vmem [#allocation2], %s796_s23 }
 0x1b8   : >>> { %v798_v54 = vld [vmem:[%s797_s30] sm:$0x1] }
 0x1b9   : >>> { %v801_v55 = vadd.f32 %v800_v53, %v798_v54 }
 0x1bb   : >>> { %v802_v56 = vmax.f32 %v801_v55, 0.0  ;;  %794 = sbr.rel (!%p791_p0) target bundleno = 433 (0x1b1), region = 274 }
 0x1bd   : >>> { %v803_v57 = vadd.f32 %v2362_v52, %v802_v56  }
 0x1bf   : >>> { %v2361_v52 = vmov %v803_v57   ;;  %v2369_v51 = vmov (%p791_p0), %v803_v57  }
 0x1c0 PF: >> { %s804_s0 = sadd.s32 7, %s2565_s21  ;;  %v2380_v58 = vmov 0.0   ;;  %v2370_v51 = vphi %v2368_v51, %v2369_v51  }
 0x1c1   : >> { %s2627_s15 = sld [smem:[#allocation7 + %s804_s0]]  }
 0x1c7   : >> { %p1570_p1 = scmp.ge.s32.totalorder %s2617_s26, %s2627_s15 }
 0x1c8   : >> { %s2376_s17 = smov (!%p1570_p1), %s2617_s26  }
 0x1c9   : >> { %1572 = sbr.rel (%p1570_p1) target bundleno = 478 (0x1de), region = 279 }
 0x1ce   : >> { %v2372_v59 = vmov 0.0  }
 0x1cf LB: >>> { %s813_s24 = sld [smem:[#allocation6 + %s2378_s17]]  ;;  %s816_s28 = scalar_lea.vmem %s2506_s29, %s2378_s17  ;;  %s2378_s17 = sphi %s2376_s17, %s809_s17   ;;  %v2374_v59 = vphi %v2372_v59, %v2373_v59  }
 0x1d0   : >>> { %v817_v60 = vld [vmem:[%s816_s28] sm:$0x1]  ;;  %s809_s17 = sadd.s32 1, %s2378_s17  }
 0x1d1   : >>> { %p808_p2 = scmp.ge.s32.totalorder %s809_s17, %s2627_s15 }
 0x1d5   : >>> { %s814_s23 = scalar_lea.vmem [#allocation2], %s813_s24 }
 0x1d6   : >>> { %v815_v61 = vld [vmem:[%s814_s23] sm:$0x1] }
 0x1d7   : >>> { %v818_v62 = vadd.f32 %v817_v60, %v815_v61 }
 0x1d9   : >>> { %v819_v63 = vmax.f32 %v818_v62, 0.0  ;;  %811 = sbr.rel (!%p808_p2) target bundleno = 463 (0x1cf), region = 285 }
 0x1db   : >>> { %v820_v0 = vadd.f32 %v2374_v59, %v819_v63  }
 0x1dd   : >>> { %v2373_v59 = vmov %v820_v0   ;;  %v2381_v58 = vmov (%p808_p2), %v820_v0  }
 0x1de PF: >> { %s821_s26 = sadd.s32 8, %s2565_s21  ;;  %v2392_v1 = vmov 0.0   ;;  %v2382_v58 = vphi %v2380_v58, %v2381_v58  }
 0x1df   : >> { %s822_s14 = sld [smem:[#allocation7 + %s821_s26]] }
 0x1e5   : >> { %p1578_p3 = scmp.ge.s32.totalorder %s2627_s15, %s822_s14 }
 0x1e6   : >> { %s2388_s30 = smov (!%p1578_p3), %s2627_s15  }
 0x1e7   : >> { %1580 = sbr.rel (%p1578_p3) target bundleno = 508 (0x1fc), region = 290 }
 0x1ec   : >> { %v2384_v2 = vmov 0.0  }
 0x1ed LB: >>> { %s830_s0 = sld [smem:[#allocation6 + %s2390_s30]]  ;;  %s833_s17 = scalar_lea.vmem %s2506_s29, %s2390_s30  ;;  %s2390_s30 = sphi %s2388_s30, %s826_s30   ;;  %v2386_v2 = vphi %v2384_v2, %v2385_v2  }
 0x1ee   : >>> { %v834_v3 = vld [vmem:[%s833_s17] sm:$0x1]  ;;  %s826_s30 = sadd.s32 1, %s2390_s30  }
 0x1ef   : >>> { %p825_p4 = scmp.ge.s32.totalorder %s826_s30, %s822_s14 }
 0x1f3   : >>> { %s831_s24 = scalar_lea.vmem [#allocation2], %s830_s0 }
 0x1f4   : >>> { %v832_v4 = vld [vmem:[%s831_s24] sm:$0x1] }
 0x1f5   : >>> { %v835_v5 = vadd.f32 %v834_v3, %v832_v4 }
 0x1f7   : >>> { %v836_v6 = vmax.f32 %v835_v5, 0.0  ;;  %828 = sbr.rel (!%p825_p4) target bundleno = 493 (0x1ed), region = 296 }
 0x1f9   : >>> { %v837_v7 = vadd.f32 %v2386_v2, %v836_v6  }
 0x1fb   : >>> { %v2385_v2 = vmov %v837_v7   ;;  %v2393_v1 = vmov (%p825_p4), %v837_v7  }
 0x1fc PF: >> { %v839_v8 = vrot.slane %v2322_v23, 7  ;;  %v842_v9 = vrot.slane %v2334_v30, 6  ;;  %v845_v10 = vrot.slane %v2346_v37, 5  ;;  %v848_v11 = vrot.slane %v2358_v44, 4  ;;  %s873_s15 = scalar_lea.vmem [#allocation3], %s2565_s21  ;;  %s699_s18 = sadd.s32 1, %s2298_s18   ;;  %v2394_v1 = vphi %v2392_v1, %v2393_v1  }
 0x1fd   : >> { %v851_v12 = vrot.slane %v2370_v51, 3  ;;  %vm859_vm3 = vcmask 1040384   ;;  %vm861_vm4 = vcmask 1041408   ;;  %vm863_vm5 = vcmask 1042432   ;;  %p696_p5 = scmp.ge.s32.totalorder %s699_s18, 2  }
 0x1fe   : >> { %v860_v13 = vsel %vm859_vm3, %v2310_v16, %v839_v8  ;;  %vm865_vm6 = vcmask 1043456   ;;  %v854_v14 = vrot.slane %v2382_v58, 2  ;;  %vm867_vm7 = vcmask 1044480   ;;  %v2102_v16 = vld [vmem:[%s2511_s16 + $0x38] sm:$0xff] (%p696_p5)   ;;  %v2103_v24 = vld [vmem:[%s2511_s16 + $0x30] sm:$0xff] (%p696_p5)   ;;  %v2104_v25 = vld [vmem:[%s2511_s16 + $0x28] sm:$0xff] (%p696_p5)  }
 0x1ff   : >> { %v862_v15 = vsel %vm861_vm4, %v860_v13, %v842_v9  ;;  %v857_v17 = vrot.slane %v2394_v1, 1  ;;  %vm869_vm8 = vcmask 1045504   ;;  %vm871_vm9 = vcmask 1046528   ;;  %v2105_v26 = vld [vmem:[%s2511_s16 + $0x20] sm:$0xff] (%p696_p5)   ;;  %v2110_v27 = vld [vmem:[%s2516_s20 + $0x38] sm:$0xff] (%p696_p5)   ;;  %v2111_v28 = vld [vmem:[%s2516_s20 + $0x30] sm:$0xff] (%p696_p5)  }
 0x200   : >> { %v864_v18 = vsel %vm863_vm5, %v862_v15, %v845_v10  ;;  %v2401_v23 = vmov (%p696_p5), 0.0   ;;  %vm2402_vm10 = vmmov (%p696_p5), 0   ;;  %v2106_v29 = vld [vmem:[%s2511_s16 + $0x18] sm:$0xff] (%p696_p5)   ;;  %v2112_v30 = vld [vmem:[%s2516_s20 + $0x28] sm:$0xff] (%p696_p5)   ;;  %v2107_v31 = vld [vmem:[%s2511_s16 + $0x10] sm:$0xff] (%p696_p5)   ;;  %p1710_p6 = scmp.ge.s32.totalorder (%p696_p5), %s2495_s22, 2 }
 0x201   : >> { %v866_v19 = vsel %vm865_vm6, %v864_v18, %v848_v11  ;;  %698 = sbr.rel (!%p696_p5) target bundleno = 267 (0x10b), region = 307  ;;  %1789 = vmatprep.subr.bf16.mxu0 (%p696_p5), %v2401_v23  ;;  %1809 = vmatprep.subr.bf16.mxu1 (%p696_p5), %v2401_v23  ;;  %v2113_v32 = vld [vmem:[%s2516_s20 + $0x20] sm:$0xff] (%p696_p5)   ;;  %v2108_v33 = vld [vmem:[%s2511_s16 + $0x8] sm:$0xff] (%p696_p5)   ;;  %v2114_v38 = vld [vmem:[%s2516_s20 + $0x18] sm:$0xff] (%p696_p5)  }
 0x202   : >> { %v868_v20 = vsel %vm867_vm7, %v866_v19, %v851_v12  ;;  %1790 = vmatpush3.bf16.msra.mxu0 (%p696_p5), %v2102_v16  ;;  %1805 = vmatprep.mubr.msk.bf16.mxu0 (%p696_p5), %vm2402_vm10, %v2401_v23  ;;  %v2659_v34 = vld [vmem:[#allocation2] sm:$0xff] (%p696_p5)  ;;  %v2661_v35 = vld [vmem:[#allocation2 + $0x8] sm:$0xff] (%p696_p5)  ;;  %v2115_v43 = vld [vmem:[%s2516_s20 + $0x10] sm:$0xff] (%p696_p5)  }
 0x203   : >> { %v870_v21 = vsel %vm869_vm8, %v868_v20, %v854_v14  ;;  %1791 = vmatprep.subr.bf16.mxu0 (%p696_p5), %v2401_v23  ;;  %1825 = vmatprep.mubr.msk.bf16.mxu1 (%p696_p5), %vm2402_vm10, %v2401_v23  ;;  %v2109_v41 = vld [vmem:[%s2511_s16] sm:$0xff] (%p696_p5)   ;;  %v2116_v44 = vld [vmem:[%s2516_s20 + $0x8] sm:$0xff] (%p696_p5)  }
 0x204   : >> { %v872_v22 = vsel %vm871_vm9, %v870_v21, %v857_v17  ;;  %1810 = vmatpush3.bf16.msra.mxu1 (%p696_p5), %v2110_v27  ;;  %v2117_v45 = vld [vmem:[%s2516_s20] sm:$0xff] (%p696_p5)  }
 0x205   : >> { %874 = vst [vmem:[%s873_s15] sm:$0xff] %v872_v22  ;;  %1811 = vmatprep.subr.bf16.mxu1 (%p696_p5), %v2401_v23  ;;  %v1698_v46 = vld [vmem:[%s2521_s1] ss:$0 sm:$0xff] (%p696_p5)  ;;  %v1699_v49 = vld [vmem:[%s2521_s1 + $0x1] ss:$0 sm:$0xff] (%p696_p5) }
 0x206   : > { %1792 = vmatpush3.bf16.msra.mxu0 %v2103_v24  ;;  %v1708_v59 = vld [vmem:[%s2526_s25] ss:$0 sm:$0xff]  ;;  %v1709_v61 = vld [vmem:[%s2526_s25 + $0x1] ss:$0 sm:$0xff] }
 0x207   : > { %1793 = vmatprep.subr.bf16.mxu0 %v2401_v23 }
 0x208   : > { %1812 = vmatpush3.bf16.msra.mxu1 %v2111_v28 }
 0x209   : > { %1813 = vmatprep.subr.bf16.mxu1 %v2401_v23 }
 0x20a   : > { %1794 = vmatpush3.bf16.msra.mxu0 %v2104_v25 }
 0x20b   : > { %1795 = vmatprep.subr.bf16.mxu0 %v2401_v23 }
 0x20c   : > { %1814 = vmatpush3.bf16.msra.mxu1 %v2112_v30  ;;  %v877_v36 = vld [vmem:[#allocation3] sm:$0xff]  ;;  %v878_v37 = vld [vmem:[#allocation3 + $0x8] sm:$0xff] }
 0x20d   : > { %1815 = vmatprep.subr.bf16.mxu1 %v2401_v23  ;;  %v879_v39 = vadd.f32 %v877_v36, %v2659_v34  ;;  %v880_v40 = vadd.f32 %v878_v37, %v2661_v35 }
 0x20e   : > { %1796 = vmatpush3.bf16.msra.mxu0 %v2105_v26 }
 0x20f   : > { %1797 = vmatprep.subr.bf16.mxu0 %v2401_v23  ;;  %v881_v42 = vpack.c.bf16 %v880_v40, %v879_v39 }
 0x210   : > { %1816 = vmatpush3.bf16.msra.mxu1 %v2113_v32 }
 0x211   : > { %1817 = vmatprep.subr.bf16.mxu1 %v2401_v23 }
 0x212   : > { %1798 = vmatpush3.bf16.msra.mxu0 %v2106_v29 }
 0x213   : > { %1799 = vmatprep.subr.bf16.mxu0 %v2401_v23 }
 0x214   : > { %1818 = vmatpush3.bf16.msra.mxu1 %v2114_v38 }
 0x215   : > { %1819 = vmatprep.subr.bf16.mxu1 %v2401_v23 }
 0x216   : > { %1800 = vmatpush3.bf16.msra.mxu0 %v2107_v31 }
 0x217   : > { %1801 = vmatprep.subr.bf16.mxu0 %v2401_v23 }
 0x218   : > { %1820 = vmatpush3.bf16.msra.mxu1 %v2115_v43 }
 0x219   : > { %1821 = vmatprep.subr.bf16.mxu1 %v2401_v23 }
 0x21a   : > { %1802 = vmatpush3.bf16.msra.mxu0 %v2108_v33 }
 0x21b   : > { %1803 = vmatprep.subr.bf16.mxu0 %v2401_v23 }
 0x21c   : > { %1822 = vmatpush3.bf16.msra.mxu1 %v2116_v44 }
 0x21d   : > { %1823 = vmatprep.subr.bf16.mxu1 %v2401_v23 }
 0x21e   : > { %1804 = vmatpush3.bf16.msra.mxu0 %v2109_v41 }
 0x220   : > { %1824 = vmatpush3.bf16.msra.mxu1 %v2117_v45 }
 0x221   : > { %1806 = vmatmul.mubr.bf16.vlgmr.msra.gmra.mxu0 %v881_v42 }
 0x2e1   : > { %v980_v47 = vpop.f32.mrf.mxu0 }
 0x2e2   : > { %v992_v48 = vmul.f32 %v1698_v46, %v980_v47 }
 0x2e3   : > { %v1807_v50 = vpop.f32.mrf.mxu0 }
 0x2e4   : > { %v999_v52 = vadd.f32 %v1699_v49, %v992_v48 }
 0x2e5   : > { %v983_v51 = vpop.f32.mrf.mxu0 }
 0x2e6   : > { %v993_v53 = vmul.f32 %v1698_v46, %v983_v51  ;;  %v1001_v56 = vmax.f32 %v999_v52, 0.0 }
 0x2e7   : > { %v1808_v54 = vpop.f32.mrf.mxu0 }
 0x2e8   : > { %v1000_v55 = vadd.f32 %v1699_v49, %v993_v53 }
 0x2ea   : > { %v1002_v57 = vmax.f32 %v1000_v55, 0.0 }
 0x2ec   : > { %v1003_v58 = vpack.c.bf16 %v1002_v57, %v1001_v56 }
 0x2ee   : > { %1826 = vmatmul.mubr.bf16.vlgmr.msra.gmra.mxu1 %v1003_v58 }
 0x3ae   : > { %v1102_v60 = vpop.f32.mrf.mxu1 }
 0x3af   : > { %v1114_v62 = vmul.f32 %v1708_v59, %v1102_v60 }
 0x3b0   : > { %v1827_v63 = vpop.f32.mrf.mxu1 }
 0x3b1   : > { %v1121_v0 = vadd.f32 %v1709_v61, %v1114_v62  ;;  %1126 = sbr.rel (%p1710_p6) target bundleno = 954 (0x3ba), region = 143 }
 0x3b2   : > { %v1105_v1 = vpop.f32.mrf.mxu1 }
 0x3b3   : > { %v1115_v2 = vmul.f32 %v1708_v59, %v1105_v1 }
 0x3b4   : > { %v1828_v3 = vpop.f32.mrf.mxu1 }
 0x3b5   : > { %v1122_v4 = vadd.f32 %v1709_v61, %v1115_v2 }
 0x3b6   : > { %v1127_v5 = vmax.f32 %v1121_v0, 0.0 }
 0x3b7   : > { %v1128_v6 = vmax.f32 %v1122_v4, 0.0 }
 0x3b8   : > { %1129 = vst [vmem:[#allocation8] sm:$0xff] %v1127_v5 }
 0x3b9   : > { %1130 = vst [vmem:[#allocation8 + $0x8] sm:$0xff] %v1128_v6 }
 0x3ba PF: > { %p1711_p7 = scmp.ne.s32.totalorder %s2495_s22, 2 }
 0x3bc   : > { %1134 = sbr.rel (%p1711_p7) target bundleno = 962 (0x3c2), region = 147 }
 0x3c1   : > { %1135 = vst [vmem:[#allocation8] sm:$0xff] %v1121_v0  ;;  %1136 = vst [vmem:[#allocation8 + $0x8] sm:$0xff] %v1122_v4 }
 0x3c2 PF: > { %1139 = sbr.rel (%p1710_p6) target bundleno = 1570 (0x622), region = 151 }
 0x3c7   : > { %v1141_v7 = vpack.c.bf16 %v2661_v35, %v2659_v34  ;;  %v1140_v8 = vld [vmem:[%s2719_s4] sm:$0x1]  ;;  %v2118_v9 = vld [vmem:[%s2531_s5 + $0x38] sm:$0xff]   ;;  %v2403_v10 = vmov 0.0   ;;  %vm2404_vm11 = vmmov 0   ;;  %vm1143_vm12 = vcmask 130048  }
 0x3c8   : > { %1829 = vmatprep.subr.bf16.mxu0 %v2403_v10  ;;  %1831 = vmatprep.mubr.msk.bf16.mxu0 %vm2404_vm11, %v2403_v10  ;;  %v2119_v11 = vld [vmem:[%s2531_s5 + $0x30] sm:$0xff]   ;;  %v2120_v12 = vld [vmem:[%s2531_s5 + $0x28] sm:$0xff]   ;;  %v2121_v13 = vld [vmem:[%s2531_s5 + $0x20] sm:$0xff]  }
 0x3c9   : > { %1830 = vmatpush3.bf16.msra.mxu0 %v1141_v7  ;;  %1835 = vmatprep.subr.bf16.mxu1 %v2403_v10  ;;  %v2122_v14 = vld [vmem:[%s2531_s5 + $0x18] sm:$0xff]   ;;  %v2123_v15 = vld [vmem:[%s2531_s5 + $0x10] sm:$0xff]   ;;  %v2124_v17 = vld [vmem:[%s2531_s5 + $0x8] sm:$0xff]  }
 0x3ca   : > { %1836 = vmatpush3.bf16.msra.mxu1 %v2118_v9  ;;  %1851 = vmatprep.mubr.msk.bf16.mxu1 %vm2404_vm11, %v2403_v10  ;;  %v2125_v18 = vld [vmem:[%s2531_s5] sm:$0xff]   ;;  %v2126_v19 = vld [vmem:[%s2541_s6 + $0x38] sm:$0xff]   ;;  %v2127_v20 = vld [vmem:[%s2541_s6 + $0x30] sm:$0xff]  }
 0x3cb   : > { %1837 = vmatprep.subr.bf16.mxu1 %v2403_v10  ;;  %1855 = vmatprep.subr.bf16.mxu0 %v2403_v10  ;;  %v2128_v21 = vld [vmem:[%s2541_s6 + $0x28] sm:$0xff]   ;;  %v2129_v22 = vld [vmem:[%s2541_s6 + $0x20] sm:$0xff]   ;;  %v2130_v16 = vld [vmem:[%s2541_s6 + $0x18] sm:$0xff]  }
 0x3cc   : > { %1832 = vmatmul.mubr.msk.bf16.vlgmr.msra.gmra.mxu0 %vm1143_vm12, %v1140_v8  ;;  %v2131_v23 = vld [vmem:[%s2541_s6 + $0x10] sm:$0xff]   ;;  %v1142_v24 = vld [vmem:[#allocation4] sm:$0x3]  ;;  %v2132_v31 = vld [vmem:[%s2541_s6 + $0x8] sm:$0xff]  }
 0x3cd   : > { %1871 = vmatprep.mubr.msk.bf16.mxu0 %vm2404_vm11, %v2403_v10  ;;  %1856 = vmatpush3.bf16.msra.mxu0 %v2126_v19  ;;  %v2133_v32 = vld [vmem:[%s2541_s6] sm:$0xff]  }
 0x3ce   : > { %1838 = vmatpush3.bf16.msra.mxu1 %v2119_v11  ;;  %1857 = vmatprep.subr.bf16.mxu0 %v2403_v10  ;;  %v1722_v33 = vld [vmem:[%s2536_s19] ss:$0 sm:$0xff]  ;;  %v1723_v35 = vld [vmem:[%s2536_s19 + $0x1] ss:$0 sm:$0xff] }
 0x3cf   : > { %1839 = vmatprep.subr.bf16.mxu1 %v2403_v10  ;;  %v1732_v43 = vld [vmem:[%s2546_s27] ss:$0 sm:$0xff]  ;;  %v1733_v45 = vld [vmem:[%s2546_s27 + $0x1] ss:$0 sm:$0xff] }
 0x3d1   : > { %1858 = vmatpush3.bf16.msra.mxu0 %v2127_v20 }
 0x3d2   : > { %1840 = vmatpush3.bf16.msra.mxu1 %v2120_v12  ;;  %1859 = vmatprep.subr.bf16.mxu0 %v2403_v10 }
 0x3d3   : > { %1841 = vmatprep.subr.bf16.mxu1 %v2403_v10 }
 0x3d5   : > { %1860 = vmatpush3.bf16.msra.mxu0 %v2128_v21 }
 0x3d6   : > { %1842 = vmatpush3.bf16.msra.mxu1 %v2121_v13  ;;  %1861 = vmatprep.subr.bf16.mxu0 %v2403_v10 }
 0x3d7   : > { %1843 = vmatprep.subr.bf16.mxu1 %v2403_v10 }
 0x3d9   : > { %1862 = vmatpush3.bf16.msra.mxu0 %v2129_v22 }
 0x3da   : > { %1844 = vmatpush3.bf16.msra.mxu1 %v2122_v14  ;;  %1863 = vmatprep.subr.bf16.mxu0 %v2403_v10 }
 0x3db   : > { %1845 = vmatprep.subr.bf16.mxu1 %v2403_v10 }
 0x3dd   : > { %1864 = vmatpush3.bf16.msra.mxu0 %v2130_v16 }
 0x3de   : > { %1846 = vmatpush3.bf16.msra.mxu1 %v2123_v15  ;;  %1865 = vmatprep.subr.bf16.mxu0 %v2403_v10 }
 0x3df   : > { %1847 = vmatprep.subr.bf16.mxu1 %v2403_v10 }
 0x3e1   : > { %1866 = vmatpush3.bf16.msra.mxu0 %v2131_v23 }
 0x3e2   : > { %1848 = vmatpush3.bf16.msra.mxu1 %v2124_v17  ;;  %1867 = vmatprep.subr.bf16.mxu0 %v2403_v10 }
 0x3e3   : > { %1849 = vmatprep.subr.bf16.mxu1 %v2403_v10 }
 0x3e5   : > { %1868 = vmatpush3.bf16.msra.mxu0 %v2132_v31 }
 0x3e6   : > { %1850 = vmatpush3.bf16.msra.mxu1 %v2125_v18  ;;  %1869 = vmatprep.subr.bf16.mxu0 %v2403_v10 }
 0x3e9   : > { %1870 = vmatpush3.bf16.msra.mxu0 %v2133_v32 }
 0x48c   : > { %v1181_v25 = vpop.f32.mrf.mxu0 }
 0x48d   : > { %v1182_v26 = vadd.f32 %v1181_v25, %v1142_v24 }
 0x48e   : > { %v1833_v27 = vpop.f32.mrf.mxu0 }
 0x48f   : > { %v1187_v28 = vpack.c.bf16 %v1182_v26, %v1182_v26 }
 0x490   : > { %v1184_v29 = vpop.f32.mrf.mxu0 }
 0x491   : > { %1852 = vmatmul.mubr.bf16.vlgmr.msra.gmra.mxu1 %v1187_v28 }
 0x492   : > { %v1834_v30 = vpop.f32.mrf.mxu0 }
 0x551   : > { %v1286_v34 = vpop.f32.mrf.mxu1 }
 0x552   : > { %v1297_v36 = vmul.f32 %v1722_v33, %v1286_v34 }
 0x553   : > { %v1853_v37 = vpop.f32.mrf.mxu1 }
 0x554   : > { %v1303_v38 = vadd.f32 %v1723_v35, %v1297_v36 }
 0x555   : > { %v1289_v39 = vpop.f32.mrf.mxu1 }
 0x556   : > { %v1304_v40 = vmax.f32 %v1303_v38, 0.0 }
 0x557   : > { %v1854_v41 = vpop.f32.mrf.mxu1 }
 0x558   : > { %v1305_v42 = vpack.c.bf16 %v1304_v40, %v1304_v40 }
 0x55a   : > { %1872 = vmatmul.mubr.bf16.vlgmr.msra.gmra.mxu0 %v1305_v42 }
 0x61a   : > { %v1404_v44 = vpop.f32.mrf.mxu0 }
 0x61b   : > { %v1415_v46 = vmul.f32 %v1732_v43, %v1404_v44 }
 0x61c   : > { %v1873_v47 = vpop.f32.mrf.mxu0 }
 0x61d   : > { %v1421_v48 = vadd.f32 %v1733_v45, %v1415_v46 }
 0x61e   : > { %v1407_v49 = vpop.f32.mrf.mxu0 }
 0x61f   : > { %v1422_v50 = vmax.f32 %v1421_v48, 0.0 }
 0x620   : > { %v1874_v51 = vpop.f32.mrf.mxu0 }
 0x621   : > { %1423 = vst [vmem:[#allocation4] sm:$0x3] %v1422_v50 }
 0x622 PF: > { %p1879_p8 = scmp.eq.s32.totalorder %s2495_s22, 2  ;;  %s2405_s5 = smov [#allocation8]  }
 0x623   : > { %s1430_s6 = sshll.u32 %s2405_s5, 4  ;;  %s1431_s6 = int_to_ptr.vmem [resolvable:$true] %s1430_s6 }
 0x624   : > { %s2158_s16 = scalar_lea.vmem %s1431_s6, 256  ;;  %p2165_p12 = scmp.lt.s32.totalorder %s1431_s6, %s1431_s6 }
 0x625   : > { %p2159_p9 = scmp.ne.s32.totalorder %s1431_s6, %s2158_s16  ;;  %p2166_p13 = scmp.lt.s32.totalorder %s2158_s16, %s2158_s16 }
 0x627   : > { %p2160_p10 = pnand %p2159_p9, %p1879_p8  ;;  %p2167_p0 = por %p2166_p13, %p2165_p12 }
 0x629   : > { %p2161_p11 = pneg %p2160_p10 }
 0x62b   : > { %p2168_p1 = pnand %p2167_p0, %p2161_p11 }
 0x62d   : > { %2171 = shalt.err (!%p2168_p1)
}
 0x62e   : > { %s2406_s20 = smov 128   ;;  %s2407_s25 = smov 8  }
 0x62f   : > { %s2738_s18 = sld [smem:[#allocation15_spill]] }
 0x635   : > { %1876 = dma.vmem_to_hbm [thread:$0]  (%p1879_p8), %s1431_s6, 256, %s2738_s18, [#allocation9], %s2406_s20, %s2406_s20, %s2407_s25  }
 0x636   : > { %2289 = dma.done.wait (%p1879_p8), [#allocation9], 256  }
 0x637   : > { %2291 = vsyncadd (%p1879_p8), [#allocation9], 4294967040 }
 0x638 PF: > { %s2739_s21 = sld [smem:[#allocation12_spill]] }
 0x63e   : > { %s35_s1 = sadd.s32 1, %s2739_s21  }
 0x63f   : > { %p32_p2 = scmp.ge.s32.totalorder %s35_s1, 5  }
 0x641   :  { %34 = sbr.rel (!%p32_p2) target bundleno = 28 (0x1c), region = 318 }
 0x646   :  { %1446 = vsyncpa [#allocation9], 1 }
 0x647   :  { %1448 = vsyncpa [#allocation9 + $0x1], 1 }

</bundles_post_ra>
